<compile_context>
chip_gen: v7x
topology: tpu7x:2x2x1
jax: 0.10.0
libtpu: 0.0.40
codegen_flags: <defaults>
</compile_context>

<pallas_src>
import jax
import jax.numpy as jnp
from jax.experimental import pallas as pl


# ----------------------------- Pallas kernel -------------------------------

def fused_classifier_kernel(x_ref, wct_ref, wfc_ref, b_ref, o_ref):
    """Fused synthetic backbone + class_fc_bin for the whole (padded) batch.

    x_ref:   (BPAD, Cin, HW)  input, HW on the lane axis (256 = 2*128)
    wct_ref: (F, Cin)         1x1-conv weight, pre-transposed
    wfc_ref: (F, NPAD)        fc weight, pre-transposed, zero-padded to 128
                              lanes, pre-scaled by 1/HW (GAP folded in)
    b_ref:   (1, NPAD)        fc bias, zero-padded
    o_ref:   (BPAD, NPAD)     lane/sublane-dense logits tile
    """
    wct = wct_ref[...]                             # (F, Cin), fp32
    bpad, cin, hw = x_ref.shape
    f = wct.shape[0]

    # --- synthetic backbone ---------------------------------------------
    # 1x1 conv: feat[b, f, s] = sum_c wct[f, c] * x[b, c, s].
    # Cin=4 is far too small a contraction for the MXU, so do it as `cin`
    # unrolled VPU broadcast-FMAs. The spatial (lane) axis is processed in
    # 128-lane chunks so each chunk's feat intermediate (BPAD, F, 128) stays
    # within ~half the vreg file; only the pooled (BPAD, F) accumulator is
    # carried across chunks (ReLU + sum-pool chunk exactly like full-width).
    chunk = 128 if hw % 128 == 0 else hw
    pooled = jnp.zeros((bpad, f), jnp.float32)
    for h in range(hw // chunk):                   # static unroll (2 @ HW=256)
        xh = x_ref[:, :, h * chunk:(h + 1) * chunk]          # (BPAD, Cin, chunk)
        feat = xh[:, 0:1, :] * wct[:, 0:1][None, :, :]       # (BPAD, F, chunk)
        for c in range(1, cin):                               # static unroll
            feat = feat + xh[:, c:c + 1, :] * wct[:, c:c + 1][None, :, :]
        feat = jnp.maximum(feat, 0.0)                         # ReLU (VPU)
        pooled = pooled + jnp.sum(feat, axis=-1)              # (BPAD, F)

    # --- class_fc_bin: logits = (mean-pooled feats) @ W^T + b -------------
    # GAP's 1/HW is already folded into wfc, so `pooled` is the raw sum.
    # (BPAD, F) @ (F, NPAD) = (8, 32) @ (32, 128): one multi-row MXU pass,
    # stored as a full unmasked (8, 128) tile.
    o_ref[...] = (
        jnp.dot(pooled, wfc_ref[...], preferred_element_type=jnp.float32)
        + b_ref[...]
    )


# ------------------------------ JAX wrapper ---------------------------------

def classifier_forward(x_nchw, params, num_classes):
    """Exact forward semantics of Classifier.forward (only logits are returned,
    so the backbone output never needs to be materialized in HBM)."""
    w_conv_t = params["w_conv_t"]          # (F, Cin)
    w_fc_pad = params["w_fc_pad"]          # (F, NPAD), pre-scaled by 1/HW
    b_fc_pad = params["b_fc_pad"]          # (1, NPAD)

    B, Cin, H, W = x_nchw.shape
    HW = H * W
    F = w_conv_t.shape[0]
    NPAD = w_fc_pad.shape[1]
    BPAD = ((B + 7) // 8) * 8              # sublane-aligned output tile

    # Free, contiguous reshape (no HBM transpose): HW becomes the lane axis.
    x_flat = x_nchw.reshape(B, Cin, HW)
    if BPAD != B:
        # Zero rows produce bias-only logits that are sliced off below.
        x_flat = jnp.concatenate(
            [x_flat, jnp.zeros((BPAD - B, Cin, HW), x_flat.dtype)], axis=0)

    logits_pad = pl.pallas_call(
        fused_classifier_kernel,
        out_shape=jax.ShapeDtypeStruct((BPAD, NPAD), jnp.float32),
        grid=(1,),                          # single grid step: whole batch
        in_specs=[
            pl.BlockSpec((BPAD, Cin, HW), lambda i: (0, 0, 0)),
            pl.BlockSpec((F, Cin), lambda i: (0, 0)),
            pl.BlockSpec((F, NPAD), lambda i: (0, 0)),
            pl.BlockSpec((1, NPAD), lambda i: (0, 0)),
        ],
        out_specs=pl.BlockSpec((BPAD, NPAD), lambda i: (0, 0)),
    )(x_flat, w_conv_t, w_fc_pad, b_fc_pad)

    logits = logits_pad[:B, :num_classes]   # drop batch + lane padding
    return [{"logits": logits}]


def reference_forward(x_nchw, w_conv_t, w_fc, b_fc):
    """Pure-JAX reference of the same synthetic backbone + linear head."""
    B, Cin, H, W = x_nchw.shape
    x_bcs = x_nchw.reshape(B, Cin, H * W)                      # (B, Cin, HW)
    feat = jnp.einsum("bcs,fc->bfs", x_bcs, w_conv_t)          # 1x1 conv
    feat = jnp.maximum(feat, 0.0)                              # ReLU
    pooled = jnp.mean(feat, axis=-1)                           # GAP -> (B, F)
    return pooled @ w_fc + b_fc                                # Linear


# ---------------------------------- main -------------------------------------

if __name__ == "__main__":
    # Small shapes consistent with the module: batch=2, channels=4, spatial=16,
    # backbone in_features=32, num_classes=10.
    B, Cin, H, W = 2, 4, 16, 16
    in_features, num_classes = 32, 10
    HW = H * W
    NPAD = max(128, ((num_classes + 127) // 128) * 128)   # lane-dense fc width

    key = jax.random.PRNGKey(0)
    k_x, k_conv, k_wfc, k_bfc = jax.random.split(key, 4)

    x = jax.random.normal(k_x, (B, Cin, H, W), dtype=jnp.float32)

    # Deterministic parameter init (PyTorch-style uniform bounds).
    w_conv = jax.random.uniform(
        k_conv, (Cin, in_features), dtype=jnp.float32,
        minval=-1.0 / (Cin ** 0.5), maxval=1.0 / (Cin ** 0.5))
    bound = 1.0 / (in_features ** 0.5)
    # nn.Linear stores weight as (num_classes, in_features); keep it
    # pre-transposed to (in_features, num_classes) for the matmul kernel.
    w_fc = jax.random.uniform(
        k_wfc, (in_features, num_classes), dtype=jnp.float32,
        minval=-bound, maxval=bound)
    b_fc = jax.random.uniform(
        k_bfc, (num_classes,), dtype=jnp.float32, minval=-bound, maxval=bound)

    # Kernel-layout params: conv weight transposed to (F, Cin); fc weight/bias
    # zero-padded to 128 output lanes for unmasked stores. The 1/HW global-
    # average-pool scale is folded into the fc weight (ReLU commutes with it
    # only because the scale sits AFTER the ReLU).
    w_conv_t = jnp.transpose(w_conv)                                   # (F, Cin)
    w_fc_pad = (jnp.zeros((in_features, NPAD), jnp.float32)
                .at[:, :num_classes].set(w_fc * (1.0 / HW)))
    b_fc_pad = jnp.zeros((1, NPAD), jnp.float32).at[0, :num_classes].set(b_fc)

    params = {"w_conv_t": w_conv_t, "w_fc_pad": w_fc_pad, "b_fc_pad": b_fc_pad}

    out = classifier_forward(x, params, num_classes)
    logits = out[0]["logits"]
    jax.block_until_ready(logits)

    assert logits.shape == (B, num_classes), logits.shape

    # Numerical check against a pure-JAX reference.
    ref = reference_forward(x, w_conv_t, w_fc, b_fc)
    assert jnp.allclose(logits, ref, atol=2e-4, rtol=2e-4), (
        float(jnp.max(jnp.abs(logits - ref))))

    print("KERNEL_OK")
</pallas_src>

<mosaic_0001>
module attributes {stable_mosaic.version = 11 : i64} {
  func.func @fused_classifier_kernel(%arg0: i32, %arg1: memref<8x4x256xf32, #tpu.memory_space<vmem>>, %arg2: memref<32x4xf32, #tpu.memory_space<vmem>>, %arg3: memref<32x128xf32, #tpu.memory_space<vmem>>, %arg4: memref<1x128xf32, #tpu.memory_space<vmem>>, %arg5: memref<8x128xf32, #tpu.memory_space<vmem>>) attributes {dimension_semantics = [#tpu.dimension_semantics<arbitrary>], iteration_bounds = array<i64: 1>, scalar_prefetch = 0 : i64, scratch_operands = 0 : i64, tpu.core_type = #tpu.core_type<tc>, window_params = [{pipeline_mode = #tpu.pipeline_mode<synchronous>, transform_indices = @transform_0, window_bounds = array<i64: 8, 4, 256>}, {pipeline_mode = #tpu.pipeline_mode<synchronous>, transform_indices = @transform_1, window_bounds = array<i64: 32, 4>}, {pipeline_mode = #tpu.pipeline_mode<synchronous>, transform_indices = @transform_2, window_bounds = array<i64: 32, 128>}, {pipeline_mode = #tpu.pipeline_mode<synchronous>, transform_indices = @transform_3, window_bounds = array<i64: 1, 128>}, {pipeline_mode = #tpu.pipeline_mode<synchronous>, transform_indices = @transform_4, window_bounds = array<i64: 8, 128>}]} {
    %c0 = arith.constant 0 : index
    %c0_0 = arith.constant 0 : index
    %0 = vector.load %arg2[%c0, %c0_0] : memref<32x4xf32, #tpu.memory_space<vmem>>, vector<32x4xf32>
    %cst = arith.constant 0.000000e+00 : f32
    %1 = vector.broadcast %cst : f32 to vector<8x32xf32>
    %c0_1 = arith.constant 0 : index
    %c0_2 = arith.constant 0 : index
    %c0_3 = arith.constant 0 : index
    %2 = vector.load %arg1[%c0_1, %c0_2, %c0_3] : memref<8x4x256xf32, #tpu.memory_space<vmem>>, vector<8x4x128xf32>
    %3 = vector.extract_strided_slice %2 {offsets = [0, 0, 0], sizes = [8, 1, 128], strides = [1, 1, 1]} : vector<8x4x128xf32> to vector<8x1x128xf32>
    %4 = vector.extract_strided_slice %0 {offsets = [0, 0], sizes = [32, 1], strides = [1, 1]} : vector<32x4xf32> to vector<32x1xf32>
    %5 = vector.shape_cast %4 : vector<32x1xf32> to vector<1x32x1xf32>
    %6 = vector.broadcast %3 : vector<8x1x128xf32> to vector<8x32x128xf32>
    %7 = vector.broadcast %5 : vector<1x32x1xf32> to vector<8x32x128xf32>
    %8 = arith.mulf %6, %7 : vector<8x32x128xf32>
    %9 = vector.extract_strided_slice %2 {offsets = [0, 1, 0], sizes = [8, 1, 128], strides = [1, 1, 1]} : vector<8x4x128xf32> to vector<8x1x128xf32>
    %10 = vector.extract_strided_slice %0 {offsets = [0, 1], sizes = [32, 1], strides = [1, 1]} : vector<32x4xf32> to vector<32x1xf32>
    %11 = vector.shape_cast %10 : vector<32x1xf32> to vector<1x32x1xf32>
    %12 = vector.broadcast %9 : vector<8x1x128xf32> to vector<8x32x128xf32>
    %13 = vector.broadcast %11 : vector<1x32x1xf32> to vector<8x32x128xf32>
    %14 = arith.mulf %12, %13 : vector<8x32x128xf32>
    %15 = arith.addf %8, %14 : vector<8x32x128xf32>
    %16 = vector.extract_strided_slice %2 {offsets = [0, 2, 0], sizes = [8, 1, 128], strides = [1, 1, 1]} : vector<8x4x128xf32> to vector<8x1x128xf32>
    %17 = vector.extract_strided_slice %0 {offsets = [0, 2], sizes = [32, 1], strides = [1, 1]} : vector<32x4xf32> to vector<32x1xf32>
    %18 = vector.shape_cast %17 : vector<32x1xf32> to vector<1x32x1xf32>
    %19 = vector.broadcast %16 : vector<8x1x128xf32> to vector<8x32x128xf32>
    %20 = vector.broadcast %18 : vector<1x32x1xf32> to vector<8x32x128xf32>
    %21 = arith.mulf %19, %20 : vector<8x32x128xf32>
    %22 = arith.addf %15, %21 : vector<8x32x128xf32>
    %23 = vector.extract_strided_slice %2 {offsets = [0, 3, 0], sizes = [8, 1, 128], strides = [1, 1, 1]} : vector<8x4x128xf32> to vector<8x1x128xf32>
    %24 = vector.extract_strided_slice %0 {offsets = [0, 3], sizes = [32, 1], strides = [1, 1]} : vector<32x4xf32> to vector<32x1xf32>
    %25 = vector.shape_cast %24 : vector<32x1xf32> to vector<1x32x1xf32>
    %26 = vector.broadcast %23 : vector<8x1x128xf32> to vector<8x32x128xf32>
    %27 = vector.broadcast %25 : vector<1x32x1xf32> to vector<8x32x128xf32>
    %28 = arith.mulf %26, %27 : vector<8x32x128xf32>
    %29 = arith.addf %22, %28 : vector<8x32x128xf32>
    %cst_4 = arith.constant 0.000000e+00 : f32
    %30 = vector.broadcast %cst_4 : f32 to vector<8x32x128xf32>
    %31 = arith.maximumf %29, %30 : vector<8x32x128xf32>
    %cst_5 = arith.constant dense<0.000000e+00> : vector<8x32xf32>
    %32 = vector.multi_reduction <add>, %31, %cst_5 [2] : vector<8x32x128xf32> to vector<8x32xf32>
    %33 = arith.addf %1, %32 : vector<8x32xf32>
    %c0_6 = arith.constant 0 : index
    %c0_7 = arith.constant 0 : index
    %c128 = arith.constant 128 : index
    %34 = vector.load %arg1[%c0_6, %c0_7, %c128] : memref<8x4x256xf32, #tpu.memory_space<vmem>>, vector<8x4x128xf32>
    %35 = vector.extract_strided_slice %34 {offsets = [0, 0, 0], sizes = [8, 1, 128], strides = [1, 1, 1]} : vector<8x4x128xf32> to vector<8x1x128xf32>
    %36 = vector.extract_strided_slice %0 {offsets = [0, 0], sizes = [32, 1], strides = [1, 1]} : vector<32x4xf32> to vector<32x1xf32>
    %37 = vector.shape_cast %36 : vector<32x1xf32> to vector<1x32x1xf32>
    %38 = vector.broadcast %35 : vector<8x1x128xf32> to vector<8x32x128xf32>
    %39 = vector.broadcast %37 : vector<1x32x1xf32> to vector<8x32x128xf32>
    %40 = arith.mulf %38, %39 : vector<8x32x128xf32>
    %41 = vector.extract_strided_slice %34 {offsets = [0, 1, 0], sizes = [8, 1, 128], strides = [1, 1, 1]} : vector<8x4x128xf32> to vector<8x1x128xf32>
    %42 = vector.extract_strided_slice %0 {offsets = [0, 1], sizes = [32, 1], strides = [1, 1]} : vector<32x4xf32> to vector<32x1xf32>
    %43 = vector.shape_cast %42 : vector<32x1xf32> to vector<1x32x1xf32>
    %44 = vector.broadcast %41 : vector<8x1x128xf32> to vector<8x32x128xf32>
    %45 = vector.broadcast %43 : vector<1x32x1xf32> to vector<8x32x128xf32>
    %46 = arith.mulf %44, %45 : vector<8x32x128xf32>
    %47 = arith.addf %40, %46 : vector<8x32x128xf32>
    %48 = vector.extract_strided_slice %34 {offsets = [0, 2, 0], sizes = [8, 1, 128], strides = [1, 1, 1]} : vector<8x4x128xf32> to vector<8x1x128xf32>
    %49 = vector.extract_strided_slice %0 {offsets = [0, 2], sizes = [32, 1], strides = [1, 1]} : vector<32x4xf32> to vector<32x1xf32>
    %50 = vector.shape_cast %49 : vector<32x1xf32> to vector<1x32x1xf32>
    %51 = vector.broadcast %48 : vector<8x1x128xf32> to vector<8x32x128xf32>
    %52 = vector.broadcast %50 : vector<1x32x1xf32> to vector<8x32x128xf32>
    %53 = arith.mulf %51, %52 : vector<8x32x128xf32>
    %54 = arith.addf %47, %53 : vector<8x32x128xf32>
    %55 = vector.extract_strided_slice %34 {offsets = [0, 3, 0], sizes = [8, 1, 128], strides = [1, 1, 1]} : vector<8x4x128xf32> to vector<8x1x128xf32>
    %56 = vector.extract_strided_slice %0 {offsets = [0, 3], sizes = [32, 1], strides = [1, 1]} : vector<32x4xf32> to vector<32x1xf32>
    %57 = vector.shape_cast %56 : vector<32x1xf32> to vector<1x32x1xf32>
    %58 = vector.broadcast %55 : vector<8x1x128xf32> to vector<8x32x128xf32>
    %59 = vector.broadcast %57 : vector<1x32x1xf32> to vector<8x32x128xf32>
    %60 = arith.mulf %58, %59 : vector<8x32x128xf32>
    %61 = arith.addf %54, %60 : vector<8x32x128xf32>
    %cst_8 = arith.constant 0.000000e+00 : f32
    %62 = vector.broadcast %cst_8 : f32 to vector<8x32x128xf32>
    %63 = arith.maximumf %61, %62 : vector<8x32x128xf32>
    %cst_9 = arith.constant dense<0.000000e+00> : vector<8x32xf32>
    %64 = vector.multi_reduction <add>, %63, %cst_9 [2] : vector<8x32x128xf32> to vector<8x32xf32>
    %65 = arith.addf %33, %64 : vector<8x32xf32>
    %c0_10 = arith.constant 0 : index
    %c0_11 = arith.constant 0 : index
    %66 = vector.load %arg3[%c0_10, %c0_11] : memref<32x128xf32, #tpu.memory_space<vmem>>, vector<32x128xf32>
    %cst_12 = arith.constant dense<0.000000e+00> : vector<8x128xf32>
    %67 = tpu.matmul %65, %66, %cst_12 {dimension_numbers = #tpu.dot_dimension_numbers<[1], [0], [0], [1], [0, 0, 1, 1], [], []>} : vector<8x32xf32>, vector<32x128xf32>, vector<8x128xf32> -> vector<8x128xf32>
    %c0_13 = arith.constant 0 : index
    %c0_14 = arith.constant 0 : index
    %68 = vector.load %arg4[%c0_13, %c0_14] : memref<1x128xf32, #tpu.memory_space<vmem>>, vector<1x128xf32>
    %69 = vector.broadcast %68 : vector<1x128xf32> to vector<8x128xf32>
    %70 = arith.addf %67, %69 : vector<8x128xf32>
    %c0_15 = arith.constant 0 : index
    %c0_16 = arith.constant 0 : index
    %71 = vector.load %arg5[%c0_15, %c0_16] : memref<8x128xf32, #tpu.memory_space<vmem>>, vector<8x128xf32>
    tpu.vector_store %arg5[%c0_15, %c0_16], %70 {strides = array<i32>} : memref<8x128xf32, #tpu.memory_space<vmem>>, vector<8x128xf32>,
    return
  }
  func.func @transform_0(%arg0: i32) -> (i32, i32, i32) {
    %c0_i32 = arith.constant 0 : i32
    %c0_i32_0 = arith.constant 0 : i32
    %c0_i32_1 = arith.constant 0 : i32
    %c0_i32_2 = arith.constant 0 : i32
    return %c0_i32, %c0_i32_0, %c0_i32_1 : i32, i32, i32
  }
  func.func @transform_1(%arg0: i32) -> (i32, i32) {
    %c0_i32 = arith.constant 0 : i32
    %c0_i32_0 = arith.constant 0 : i32
    %c0_i32_1 = arith.constant 0 : i32
    return %c0_i32, %c0_i32_0 : i32, i32
  }
  func.func @transform_2(%arg0: i32) -> (i32, i32) {
    %c0_i32 = arith.constant 0 : i32
    %c0_i32_0 = arith.constant 0 : i32
    %c0_i32_1 = arith.constant 0 : i32
    return %c0_i32, %c0_i32_0 : i32, i32
  }
  func.func @transform_3(%arg0: i32) -> (i32, i32) {
    %c0_i32 = arith.constant 0 : i32
    %c0_i32_0 = arith.constant 0 : i32
    %c0_i32_1 = arith.constant 0 : i32
    return %c0_i32, %c0_i32_0 : i32, i32
  }
  func.func @transform_4(%arg0: i32) -> (i32, i32) {
    %c0_i32 = arith.constant 0 : i32
    %c0_i32_0 = arith.constant 0 : i32
    %c0_i32_1 = arith.constant 0 : i32
    return %c0_i32, %c0_i32_0 : i32, i32
  }
}

</mosaic_0001>

<bundles_post_ra>
// kernel: tpu_custom_call.1
= control target key start
LH: loop header
LB: loop body
LE: loop exit
PB: predicated region body
PF: predicated region fallthrough
CT: control target
= control target key end

     0   :  { %9 = vsyncpa [#allocation3], 0  ;;  %s2432_s0 = inlined_call_operand.hbm [shape: f32[8,4,256], index: 0, kind: input, shape index: {}]   ;;  %s2433_s1 = inlined_call_operand.vmem [shape: f32[32,4], index: 1, kind: input, shape index: {}]   ;;  %s2434_s2 = inlined_call_operand.vmem [shape: f32[32,128], index: 2, kind: input, shape index: {}]   ;;  %s2435_s3 = inlined_call_operand.vmem [shape: f32[1,128], index: 3, kind: input, shape index: {}]   ;;  %s2436_s4 = inlined_call_operand.hbm [shape: f32[8,128], index: 4, kind: output, shape index: {}]  }
   0x1   :  { %10 = vsyncpa [#allocation4], 0  ;;  %s1475_s15 = smov [#allocation2]   ;;  %s1427_s19 = scalar_lea.hbm %s2432_s0, 1024 }
   0x2   :  { %s16_s16 = sshll.u32 %s1475_s15, 4  ;;  %p1428_p0 = scmp.ne.s32.totalorder %s2432_s0, %s1427_s19  ;;  %s17_s16 = int_to_ptr.vmem [resolvable:$true] %s16_s16 }
   0x3   :  { %p1431_p1 = scmp.lt.u32.totalorder %s1427_s19, %s2432_s0 }
   0x5   :  { %p1433_p2 = pnand %p1431_p1, %p1428_p0 }
   0x7   :  { %1436 = shalt.err (!%p1433_p2)
}
   0x8   :  { %s1437_s24 = scalar_lea.vmem %s17_s16, 1024  ;;  %p1442_p4 = scmp.lt.s32.totalorder %s17_s16, %s17_s16 }
   0x9   :  { %p1438_p3 = scmp.ne.s32.totalorder %s17_s16, %s1437_s24  ;;  %p1443_p5 = scmp.lt.s32.totalorder %s1437_s24, %s1437_s24 }
   0xb   :  { %p1444_p6 = por %p1443_p5, %p1442_p4 }
   0xd   :  { %p1445_p7 = pnand %p1444_p6, %p1438_p3 }
   0xf   :  { %1448 = shalt.err (!%p1445_p7)
}
  0x10   :  { %s1476_s25 = smov 128   ;;  %s1477_s26 = smov 8  }
  0x11   :  { %22 = dma.hbm_to_vmem [thread:$0]  %s2432_s0, 1024, %s17_s16, [#allocation3], %s1476_s25, %s1476_s25, %s1477_s26  }
  0x12   :  { %1471 = dma.done.wait [#allocation3], 1024  }
  0x13   :  { %1472 = vsyncadd [#allocation3], 4294966272  ;;  %v1478_v0 = vmov 1   ;;  %v1479_v1 = vmov 0   ;;  %v32_v2 = vld [vmem:[%s2433_s1] sm:$0xff]  ;;  %v33_v3 = vld [vmem:[%s2433_s1 + $0x8] sm:$0xff]  ;;  %v2437_v8 = vlaneseq }
  0x14   :  { %1422 = vset.pattern.permute.xlu1 %v1478_v0  ;;  %1421 = vset.pattern.permute.xlu0 %v1479_v1  ;;  %v34_v4 = vld [vmem:[%s2433_s1 + $0x10] sm:$0xff]  ;;  %v35_v5 = vld [vmem:[%s2433_s1 + $0x18] sm:$0xff]  ;;  %v1480_v6 = vmov 2   ;;  %v1481_v7 = vmov 3   ;;  %v36_v12 = vld [vmem:[#allocation2] sm:$0xf] }
  0x15   :  { %161 = vperm.xlu1 %1422, %v32_v2   ;;  %78 = vperm.xlu0 %1421, %v32_v2   ;;  %v1536_v9 = vshrl.u32 %v2437_v8, 7  ;;  %v37_v13 = vld [vmem:[#allocation2 + $0x8] sm:$0xf]  ;;  %v592_v14 = vld [vmem:[#allocation2 + $0x4] sm:$0xf]  ;;  %vm1483_vm0 = vmmov 0  }
  0x16   :  { %v593_v18 = vld [vmem:[#allocation2 + $0xc] sm:$0xf]  ;;  %v38_v19 = vld [vmem:[#allocation2 + $0x10] sm:$0xf]  ;;  %v594_v23 = vld [vmem:[#allocation2 + $0x14] sm:$0xf] }
  0x17   :  { %2505 = vst [vmem:[#allocation8_spill] sm:$0xff] %v1536_v9  ;;  %v1539_v10 = vsub.s32 0, %v1536_v9  ;;  %v1542_v11 = vsub.s32 1, %v1536_v9  ;;  %v1549_v17 = vsub.s32 2, %v1536_v9  ;;  %v1561_v24 = vsub.s32 3, %v1536_v9  ;;  %s1485_s18 = smov [#allocation5]  }
  0x18   :  { %v39_v28 = vld [vmem:[#allocation2 + $0x18] sm:$0xf]  ;;  %v595_v43 = vld [vmem:[#allocation2 + $0x1c] sm:$0xf]  ;;  %v40_v44 = vld [vmem:[#allocation2 + $0x20] sm:$0xf] }
  0x19   :  { %165 = vperm.xlu1 %1422, %v33_v3   ;;  %83 = vperm.xlu0 %1421, %v33_v3   ;;  %2508 = vst [vmem:[#allocation11_spill] sm:$0xff] %v1549_v17  ;;  %v1552_v20 = vrot.slane %v36_v12, %v1539_v10  ;;  %v1555_v21 = vrot.slane %v36_v12, %v1542_v11  ;;  %2510 = vst [vmem:[#allocation13_spill] sm:$0xff] %v1561_v24  ;;  %v596_v49 = vld [vmem:[#allocation2 + $0x24] sm:$0xf]  ;;  %v41_v54 = vld [vmem:[#allocation2 + $0x28] sm:$0xf] }
  0x1a   :  { %v1558_v22 = vrot.slane %v37_v13, %v1539_v10  ;;  %v1564_v25 = vrot.slane %v37_v13, %v1542_v11  ;;  %v1567_v26 = vrot.slane %v592_v14, %v1539_v10  ;;  %v1570_v27 = vrot.slane %v592_v14, %v1542_v11  ;;  %v597_v61 = vld [vmem:[#allocation2 + $0x2c] sm:$0xf]  ;;  %s1377_s19 = sshll.u32 %s1485_s18, 4  ;;  %s1378_s19 = int_to_ptr.vmem [resolvable:$true] %s1377_s19 }
  0x1b   :  { %v1573_v29 = vrot.slane %v593_v18, %v1539_v10  ;;  %v1576_v30 = vrot.slane %v593_v18, %v1542_v11  ;;  %v1579_v31 = vrot.slane %v38_v19, %v1539_v10  ;;  %v1582_v32 = vrot.slane %v38_v19, %v1542_v11  ;;  %s1449_s20 = scalar_lea.vmem %s1378_s19, 128  ;;  %p1454_p9 = scmp.lt.s32.totalorder %s1378_s19, %s1378_s19 }
  0x1c   :  { %2509 = vst [vmem:[#allocation12_spill] sm:$0xff] %v1558_v22  ;;  %2511 = vst [vmem:[#allocation14_spill] sm:$0xff] %v1564_v25  ;;  %v1589_v35 = vrot.slane %v36_v12, %v1549_v17  ;;  %v1592_v36 = vrot.slane %v37_v13, %v1549_v17  ;;  %v1595_v37 = vrot.slane %v594_v23, %v1539_v10  ;;  %vm1134_vm1 = vcmask 130112   ;;  %p1450_p8 = scmp.ne.s32.totalorder %s1378_s19, %s1449_s20  ;;  %p1455_p10 = scmp.lt.s32.totalorder %s1449_s20, %s1449_s20 }
  0x1d   :  { %169 = vperm.xlu1 %1422, %v34_v4   ;;  %88 = vperm.xlu0 %1421, %v34_v4   ;;  %2512 = vst [vmem:[#allocation15_spill] sm:$0xff] %v1567_v26  ;;  %2513 = vst [vmem:[#allocation16_spill] sm:$0xff] %v1570_v27  ;;  %v1598_v38 = vrot.slane %v594_v23, %v1542_v11  ;;  %v1601_v39 = vrot.slane %v592_v14, %v1549_v17  ;;  %vm1141_vm2 = vcmask 195712   ;;  %vm1148_vm3 = vcmask 261312  }
  0x1e   :  { %2515 = vst [vmem:[#allocation18_spill] sm:$0xff] %v1592_v36  ;;  %2516 = vst [vmem:[#allocation19_spill] sm:$0xff] %v1595_v37  ;;  %v1604_v40 = vrot.slane %v593_v18, %v1549_v17  ;;  %v1607_v41 = vrot.slane %v39_v28, %v1539_v10  ;;  %v1610_v42 = vrot.slane %v39_v28, %v1542_v11  ;;  %vm1283_vm4 = vcmask 1041409   ;;  %p1456_p11 = por %p1455_p10, %p1454_p9 }
  0x1f   :  { %v1613_v45 = vrot.slane %v36_v12, %v1561_v24  ;;  %v1616_v46 = vrot.slane %v37_v13, %v1561_v24  ;;  %v1619_v47 = vrot.slane %v38_v19, %v1549_v17  ;;  %v1622_v48 = vrot.slane %v594_v23, %v1549_v17  ;;  %v1680_v12 = vld [vmem:[#allocation2 + $0x38] sm:$0xf] }
  0x20   :  { %2517 = vst [vmem:[#allocation20_spill] sm:$0xff] %v1607_v41  ;;  %2518 = vst [vmem:[#allocation21_spill] sm:$0xff] %v1610_v42  ;;  %v1625_v50 = vrot.slane %v592_v14, %v1561_v24  ;;  %v1628_v51 = vrot.slane %v593_v18, %v1561_v24  ;;  %v1631_v52 = vrot.slane %v38_v19, %v1561_v24  ;;  %vm1285_vm5 = vcmask 1042434   ;;  %p1457_p12 = pnand %p1456_p11, %p1450_p8 }
  0x21   :  { %173 = vperm.xlu1 %1422, %v35_v5   ;;  %93 = vperm.xlu0 %1421, %v35_v5   ;;  %2519 = vst [vmem:[#allocation22_spill] sm:$0xff] %v1622_v48  ;;  %v1634_v53 = vrot.slane %v594_v23, %v1561_v24  ;;  %v1641_v57 = vrot.slane %v39_v28, %v1549_v17  ;;  %2535 = vst [vmem:[#allocation38_spill] sm:$0xff] %v1680_v12  ;;  %vm1287_vm6 = vcmask 1043459   ;;  %vm1289_vm7 = vcmask 1044484  }
  0x22   :  { %v1644_v58 = vrot.slane %v595_v43, %v1539_v10  ;;  %v1647_v59 = vrot.slane %v595_v43, %v1542_v11  ;;  %v1650_v60 = vrot.slane %v40_v44, %v1539_v10  ;;  %v1653_v62 = vrot.slane %v39_v28, %v1561_v24 }
  0x23   :  { %2520 = vst [vmem:[#allocation23_spill] sm:$0xff] %v1634_v53  ;;  %2521 = vst [vmem:[#allocation24_spill] sm:$0xff] %v1641_v57  ;;  %v1656_v63 = vrot.slane %v595_v43, %v1549_v17  ;;  %v1659_v0 = vrot.slane %v40_v44, %v1542_v11  ;;  %v1662_v1 = vrot.slane %v596_v49, %v1539_v10  ;;  %vm1291_vm8 = vcmask 1045509  }
  0x24   :  { %2522 = vst [vmem:[#allocation25_spill] sm:$0xff] %v1644_v58  ;;  %2523 = vst [vmem:[#allocation26_spill] sm:$0xff] %v1647_v59  ;;  %v1683_v13 = vrot.slane %v596_v49, %v1549_v17  ;;  %v1686_v14 = vrot.slane %v41_v54, %v1542_v11  ;;  %v1689_v18 = vrot.slane %v597_v61, %v1539_v10  ;;  %vm1293_vm9 = vcmask 1046534  }
  0x25   :  { %1424 = vset.pattern.permute.xlu1 %v1480_v6  ;;  %1423 = vset.pattern.permute.xlu0 %v1480_v6  ;;  %2524 = vst [vmem:[#allocation27_spill] sm:$0xff] %v1650_v60  ;;  %2525 = vst [vmem:[#allocation28_spill] sm:$0xff] %v1653_v62  ;;  %v1676_v6 = vrot.slane %v41_v54, %v1539_v10  ;;  %v1692_v19 = vrot.slane %v597_v61, %v1542_v11  ;;  %vm1295_vm10 = vcmask 1047559   ;;  %vm1297_vm11 = vcmask 261120  }
  0x26   :  { %277 = vperm.xlu1 %1424, %v33_v3   ;;  %273 = vperm.xlu0 %1423, %v32_v2   ;;  %2526 = vst [vmem:[#allocation29_spill] sm:$0xff] %v1656_v63  ;;  %2527 = vst [vmem:[#allocation30_spill] sm:$0xff] %v1659_v0  ;;  %v1702_v8 = vrot.slane %v596_v49, %v1561_v24 }
  0x27   :  { %2528 = vst [vmem:[#allocation31_spill] sm:$0xff] %v1662_v1  ;;  %2533 = vst [vmem:[#allocation36_spill] sm:$0xff] %v1676_v6  ;;  %v1730_v6 = vrot.slane %v41_v54, %v1561_v24 }
  0x28   :  { %2536 = vst [vmem:[#allocation39_spill] sm:$0xff] %v1683_v13  ;;  %2537 = vst [vmem:[#allocation40_spill] sm:$0xff] %v1686_v14  ;;  %v1712_v14 = vld [vmem:[#allocation2 + $0x3c] sm:$0xf] }
  0x29   :  { %2538 = vst [vmem:[#allocation41_spill] sm:$0xff] %v1689_v18  ;;  %2539 = vst [vmem:[#allocation42_spill] sm:$0xff] %v1692_v19  ;;  %v1715_v19 = vrot.slane %v41_v54, %v1549_v17  ;;  %v1748_v54 = vrot.slane %v597_v61, %v1561_v24  ;;  %v1796_v62 = vrot.slane %v1712_v14, %v1542_v11 }
  0x2a   :  { %281 = vperm.xlu1 %1424, %v34_v4   ;;  %285 = vperm.xlu0 %1423, %v35_v5   ;;  %2541 = vst [vmem:[#allocation44_spill] sm:$0xff] %v1702_v8  ;;  %2544 = vst [vmem:[#allocation47_spill] sm:$0xff] %v1712_v14 }
  0x2b   :  { %2545 = vst [vmem:[#allocation48_spill] sm:$0xff] %v1715_v19  ;;  %2549 = vst [vmem:[#allocation52_spill] sm:$0xff] %v1730_v6 }
  0x2c   :  { %2553 = vst [vmem:[#allocation56_spill] sm:$0xff] %v1748_v54  ;;  %2556 = vst [vmem:[#allocation59_spill] sm:$0xff] %v1796_v62 }
  0x2e   :  { %1425 = vset.pattern.permute.xlu1 %v1481_v7  ;;  %1426 = vset.pattern.permute.xlu0 %v1481_v7  ;;  %v1678_v7 = vld [vmem:[#allocation2 + $0x34] sm:$0xf] }
  0x2f   :  { %385 = vperm.xlu1 %1425, %v32_v2   ;;  %389 = vperm.xlu0 %1426, %v33_v3   ;;  %v1664_v2 = vld [vmem:[#allocation2 + $0x30] sm:$0xf]  ;;  %v1667_v3 = vrot.slane %v595_v43, %v1561_v24  ;;  %2534 = vst [vmem:[#allocation37_spill] sm:$0xff] %v1678_v7  ;;  %v1699_v43 = vrot.slane %v40_v44, %v1561_v24 }
  0x30   :  { %2529 = vst [vmem:[#allocation32_spill] sm:$0xff] %v1664_v2  ;;  %v1706_v9 = vrot.slane %v1664_v2, %v1539_v10  ;;  %v1710_v18 = vrot.slane %v1664_v2, %v1542_v11  ;;  %v1737_v19 = vrot.slane %v1664_v2, %v1549_v17  ;;  %v1792_v59 = vrot.slane %v1678_v7, %v1549_v17 }
  0x31   :  { %2530 = vst [vmem:[#allocation33_spill] sm:$0xff] %v1667_v3  ;;  %2540 = vst [vmem:[#allocation43_spill] sm:$0xff] %v1699_v43 }
  0x32   :  { %2542 = vst [vmem:[#allocation45_spill] sm:$0xff] %v1706_v9  ;;  %2543 = vst [vmem:[#allocation46_spill] sm:$0xff] %v1710_v18  ;;  %v1727_v9 = vrot.slane %v1680_v12, %v1539_v10  ;;  %v1733_v18 = vrot.slane %v597_v61, %v1549_v17 }
  0x33   :  { %393 = vperm.xlu1 %1425, %v34_v4   ;;  %v1670_v4 = vrot.slane %v40_v44, %v1549_v17  ;;  %v1719_v44 = vrot.slane %v1678_v7, %v1539_v10  ;;  %2551 = vst [vmem:[#allocation54_spill] sm:$0xff] %v1737_v19  ;;  %2555 = vst [vmem:[#allocation58_spill] sm:$0xff] %v1792_v59 }
  0x34   :  { %2548 = vst [vmem:[#allocation51_spill] sm:$0xff] %v1727_v9  ;;  %2550 = vst [vmem:[#allocation53_spill] sm:$0xff] %v1733_v18  ;;  %v1752_v18 = vrot.slane %v1712_v14, %v1539_v10 }
  0x35   :  { %2531 = vst [vmem:[#allocation34_spill] sm:$0xff] %v1670_v4  ;;  %2546 = vst [vmem:[#allocation49_spill] sm:$0xff] %v1719_v44  ;;  %v1741_v44 = vrot.slane %v1680_v12, %v1542_v11 }
  0x36   :  { %2554 = vst [vmem:[#allocation57_spill] sm:$0xff] %v1752_v18 }
  0x37   :  { %397 = vperm.xlu1 %1425, %v35_v5   ;;  %v1673_v5 = vrot.slane %v596_v49, %v1542_v11  ;;  %v1723_v49 = vrot.slane %v1678_v7, %v1542_v11  ;;  %2552 = vst [vmem:[#allocation55_spill] sm:$0xff] %v1741_v44 }
  0x39   :  { %2532 = vst [vmem:[#allocation35_spill] sm:$0xff] %v1673_v5  ;;  %2547 = vst [vmem:[#allocation50_spill] sm:$0xff] %v1723_v49 }
  0x94   :  { %v1544_v15 = vpop.permute.xlu1 %161  ;;  %v1546_v16 = vpop.permute.xlu0 %78 }
  0x95   :  { %2506 = vst [vmem:[#allocation9_spill] sm:$0xff] %v1544_v15  ;;  %2507 = vst [vmem:[#allocation10_spill] sm:$0xff] %v1546_v16  ;;  %v96_v49 = vmul.f32 %v1546_v16, %v1552_v20  ;;  %v176_v9 = vmul.f32 %v1544_v15, %v1555_v21  ;;  %v100_v19 = vmul.f32 %v1546_v16, %v1558_v22 }
  0x96   :  { %v180_v6 = vmul.f32 %v1544_v15, %v1564_v25  ;;  %v632_v44 = vmul.f32 %v1567_v26, %v1546_v16  ;;  %v696_v12 = vmul.f32 %v1570_v27, %v1544_v15  ;;  %v636_v10 = vmul.f32 %v1573_v29, %v1546_v16 }
  0x97   :  { %v700_v18 = vmul.f32 %v1576_v30, %v1544_v15  ;;  %v104_v54 = vmul.f32 %v1546_v16, %v1579_v31  ;;  %v184_v13 = vmul.f32 %v1544_v15, %v1582_v32  ;;  %v640_v43 = vmul.f32 %v1595_v37, %v1546_v16 }
  0x98   :  { %v1584_v33 = vpop.permute.xlu1 %165  ;;  %v1586_v34 = vpop.permute.xlu0 %83  ;;  %v704_v4 = vmul.f32 %v1598_v38, %v1544_v15  ;;  %v208_v24 = vadd.f32 %v176_v9, %v96_v49  ;;  %v212_v63 = vadd.f32 %v180_v6, %v100_v19  ;;  %v728_v15 = vadd.f32 %v696_v12, %v632_v44 }
  0x99   :  { %2514 = vst [vmem:[#allocation17_spill] sm:$0xff] %v1584_v33  ;;  %v97_v5 = vmul.f32 %v1586_v34, %v1552_v20  ;;  %v177_v1 = vmul.f32 %v1584_v33, %v1555_v21  ;;  %v101_v0 = vmul.f32 %v1586_v34, %v1558_v22  ;;  %v181_v60 = vmul.f32 %v1584_v33, %v1564_v25 }
  0x9a   :  { %v633_v3 = vmul.f32 %v1567_v26, %v1586_v34  ;;  %v697_v2 = vmul.f32 %v1570_v27, %v1584_v33  ;;  %v732_v16 = vadd.f32 %v700_v18, %v636_v10  ;;  %v637_v53 = vmul.f32 %v1573_v29, %v1586_v34 }
  0x9b   :  { %v701_v9 = vmul.f32 %v1576_v30, %v1584_v33  ;;  %v209_v19 = vadd.f32 %v177_v1, %v97_v5  ;;  %v1810_v49 = vadd.f32 %v184_v13, %v104_v54  ;;  %v213_v62 = vadd.f32 %v181_v60, %v101_v0 }
  0x9c   :  { %v1636_v55 = vpop.permute.xlu1 %169  ;;  %v1638_v56 = vpop.permute.xlu0 %88  ;;  %v729_v14 = vadd.f32 %v697_v2, %v633_v3  ;;  %v1812_v59 = vadd.f32 %v704_v4, %v640_v43  ;;  %v105_v12 = vmul.f32 %v1586_v34, %v1579_v31  ;;  %v185_v1 = vmul.f32 %v1584_v33, %v1582_v32 }
  0x9d   :  { %2558 = vst [vmem:[#allocation61_spill] sm:$0xff] %v1810_v49  ;;  %v98_v18 = vmul.f32 %v1638_v56, %v1552_v20  ;;  %v178_v44 = vmul.f32 %v1636_v55, %v1555_v21  ;;  %v1824_v5 = vmul.f32 %v1595_v37, %v1586_v34  ;;  %v1830_v2 = vadd.f32 %v701_v9, %v637_v53 }
  0x9e   :  { %2559 = vst [vmem:[#allocation62_spill] sm:$0xff] %v1812_v59  ;;  %v634_v3 = vmul.f32 %v1567_v26, %v1638_v56  ;;  %v698_v10 = vmul.f32 %v1570_v27, %v1636_v55  ;;  %v102_v17 = vmul.f32 %v1638_v56, %v1558_v22 }
  0x9f   :  { %2560 = vst [vmem:[#allocation63_spill] sm:$0xff] %v1824_v5  ;;  %2561 = vst [vmem:[#allocation64_spill] sm:$0xff] %v1830_v2  ;;  %v210_v2 = vadd.f32 %v178_v44, %v98_v18 }
  0xa0   :  { %v1694_v23 = vpop.permute.xlu1 %173  ;;  %v1696_v28 = vpop.permute.xlu0 %93 }
  0xa5   :  { %v1762_v8 = vpop.permute.xlu1 %277  ;;  %v1764_v61 = vpop.permute.xlu0 %273 }
  0xa6   :  { %v288_v6 = vmul.f32 %v1764_v61, %v1589_v35  ;;  %v289_v11 = vmul.f32 %v1762_v8, %v1589_v35  ;;  %v292_v60 = vmul.f32 %v1764_v61, %v1592_v36  ;;  %v792_v0 = vmul.f32 %v1601_v39, %v1764_v61 }
  0xa8   :  { %v320_v43 = vadd.f32 %v288_v6, %v208_v24  ;;  %v321_v54 = vadd.f32 %v289_v11, %v209_v19  ;;  %v293_v24 = vmul.f32 %v1762_v8, %v1592_v36  ;;  %v796_v6 = vmul.f32 %v1604_v40, %v1764_v61 }
  0xa9   :  { %v1798_v57 = vpop.permute.xlu1 %281  ;;  %v1800_v58 = vpop.permute.xlu0 %285  ;;  %v182_v19 = vmul.f32 %v1636_v55, %v1564_v25  ;;  %v1856_v11 = vadd.f32 %v185_v1, %v105_v12  ;;  %v324_v59 = vadd.f32 %v292_v60, %v212_v63  ;;  %v638_v36 = vmul.f32 %v1573_v29, %v1638_v56 }
  0xaa   :  { %2557 = vst [vmem:[#allocation60_spill] sm:$0xff] %v1800_v58  ;;  %v824_v58 = vadd.f32 %v792_v0, %v728_v15  ;;  %v793_v15 = vmul.f32 %v1601_v39, %v1762_v8  ;;  %v702_v63 = vmul.f32 %v1576_v30, %v1636_v55  ;;  %v106_v1 = vmul.f32 %v1638_v56, %v1579_v31 }
  0xab   :  { %v828_v18 = vadd.f32 %v796_v6, %v732_v16  ;;  %v296_v16 = vmul.f32 %v1764_v61, %v1619_v47 }
  0xae   :  { %v1834_v4 = vpop.permute.xlu1 %385  ;;  %v1836_v13 = vpop.permute.xlu0 %389 }
  0xaf   :  { %v400_v7 = vmul.f32 %v1834_v4, %v1613_v45  ;;  %v401_v53 = vmul.f32 %v1836_v13, %v1613_v45  ;;  %v404_v9 = vmul.f32 %v1834_v4, %v1616_v46  ;;  %v888_v37 = vmul.f32 %v1625_v50, %v1834_v4 }
  0xb0   :  { %v405_v48 = vmul.f32 %v1836_v13, %v1616_v46  ;;  %v892_v22 = vmul.f32 %v1628_v51, %v1834_v4 }
  0xb1   :  { %v432_v27 = vadd.f32 %v400_v7, %v320_v43  ;;  %v433_v26 = vadd.f32 %v401_v53, %v321_v54  ;;  %v436_v49 = vadd.f32 %v404_v9, %v324_v59  ;;  %v920_v25 = vadd.f32 %v888_v37, %v824_v58  ;;  %v2562_v9 = vld [vmem:[#allocation61_spill] sm:$0xff] }
  0xb2   :  { %v1864_v12 = vpop.permute.xlu1 %393  ;;  %v325_v7 = vadd.f32 %v293_v24, %v213_v62  ;;  %v889_v58 = vmul.f32 %v1625_v50, %v1836_v13  ;;  %v214_v59 = vadd.f32 %v182_v19, %v102_v17  ;;  %v186_v62 = vmul.f32 %v1636_v55, %v1582_v32  ;;  %v2563_v19 = vld [vmem:[#allocation63_spill] sm:$0xff] }
  0xb3   :  { %v464_v42 = vmax.f32 %v432_v27, 0.0  ;;  %v465_v5 = vmax.f32 %v433_v26, 0.0  ;;  %v290_v26 = vmul.f32 %v1798_v57, %v1589_v35  ;;  %v730_v27 = vadd.f32 %v698_v10, %v634_v3 }
  0xb4   :  { %v437_v37 = vadd.f32 %v405_v48, %v325_v7  ;;  %v468_v44 = vmax.f32 %v436_v49, 0.0  ;;  %v952_v60 = vmax.f32 %v920_v25, 0.0  ;;  %v924_v0 = vadd.f32 %v892_v22, %v828_v18  ;;  %v2564_v7 = vld [vmem:[#allocation21_spill] sm:$0xff] }
  0xb5   :  { %496 = vadd.xlane.f32.xlu0 %v464_v42  ;;  %498 = vadd.xlane.f32.xlu1 %v465_v5  ;;  %v402_v42 = vmul.f32 %v1864_v12, %v1613_v45  ;;  %v825_v5 = vadd.f32 %v793_v15, %v729_v14  ;;  %v99_v48 = vmul.f32 %v1696_v28, %v1552_v20 }
  0xb6   :  { %v705_v3 = vmul.f32 %v1598_v38, %v1584_v33  ;;  %v322_v17 = vadd.f32 %v290_v26, %v210_v2  ;;  %v797_v25 = vmul.f32 %v1604_v40, %v1762_v8  ;;  %v179_v22 = vmul.f32 %v1694_v23, %v1555_v21  ;;  %v2566_v26 = vld [vmem:[#allocation18_spill] sm:$0xff] }
  0xb7   :  { %v921_v49 = vadd.f32 %v889_v58, %v825_v5  ;;  %v408_v14 = vmul.f32 %v1834_v4, %v1631_v52  ;;  %v734_v43 = vadd.f32 %v702_v63, %v638_v36  ;;  %v109_v20 = vmul.f32 %v1586_v34, %v1607_v41  ;;  %v2565_v36 = vld [vmem:[#allocation64_spill] sm:$0xff] }
  0xb8   :  { %v469_v54 = vmax.f32 %v437_v37, 0.0  ;;  %v956_v10 = vmax.f32 %v924_v0, 0.0  ;;  %v434_v53 = vadd.f32 %v402_v42, %v322_v17  ;;  %v893_v2 = vmul.f32 %v1628_v51, %v1836_v13 }
  0xb9   :  { %504 = vadd.xlane.f32.xlu0 %v468_v44  ;;  %984 = vadd.xlane.f32.xlu1 %v952_v60  ;;  %v328_v24 = vadd.f32 %v296_v16, %v2562_v9  ;;  %v1897_v6 = vadd.f32 %v186_v62, %v106_v1  ;;  %v1900_v21 = vadd.f32 %v705_v3, %v2563_v19  ;;  %v953_v58 = vmax.f32 %v921_v49, 0.0  ;;  %v2567_v62 = vld [vmem:[#allocation12_spill] sm:$0xff]  ;;  %v2568_v3 = vld [vmem:[#allocation22_spill] sm:$0xff] }
  0xba   :  { %v189_v15 = vmul.f32 %v1584_v33, %v2564_v7  ;;  %v829_v63 = vadd.f32 %v797_v25, %v2565_v36  ;;  %v794_v18 = vmul.f32 %v1601_v39, %v1798_v57  ;;  %v294_v37 = vmul.f32 %v1798_v57, %v2566_v26  ;;  %v2569_v25 = vld [vmem:[#allocation14_spill] sm:$0xff]  ;;  %v1929_v36 = vpop.permute.xlu1 %397 }
  0xbb   :  { %v440_v44 = vadd.f32 %v408_v14, %v328_v24  ;;  %v211_v1 = vadd.f32 %v179_v22, %v99_v48  ;;  %v103_v60 = vmul.f32 %v1696_v28, %v2567_v62  ;;  %v466_v0 = vmax.f32 %v434_v53, 0.0 }
  0xbc   :  { %v925_v42 = vadd.f32 %v893_v2, %v829_v63  ;;  %v890_v5 = vmul.f32 %v1625_v50, %v1864_v12  ;;  %v406_v16 = vmul.f32 %v1864_v12, %v1616_v46  ;;  %v800_v17 = vmul.f32 %v2568_v3, %v1764_v61  ;;  %v2570_v2 = vld [vmem:[#allocation23_spill] sm:$0xff] }
  0xbd   :  { %506 = vadd.xlane.f32.xlu0 %v469_v54  ;;  %992 = vadd.xlane.f32.xlu1 %v956_v10  ;;  %v183_v54 = vmul.f32 %v1694_v23, %v2569_v25  ;;  %v639_v48 = vmul.f32 %v1573_v29, %v1696_v28  ;;  %v703_v22 = vmul.f32 %v1576_v30, %v1694_v23  ;;  %v472_v53 = vmax.f32 %v440_v44, 0.0  ;;  %v2573_v44 = vld [vmem:[#allocation9_spill] sm:$0xff] }
  0xbe   :  { %v826_v49 = vadd.f32 %v794_v18, %v730_v27  ;;  %v326_v14 = vadd.f32 %v294_v37, %v214_v59  ;;  %v297_v10 = vmul.f32 %v1762_v8, %v1619_v47  ;;  %v896_v9 = vmul.f32 %v2570_v2, %v1834_v4  ;;  %v2571_v59 = vld [vmem:[#allocation60_spill] sm:$0xff]  ;;  %v2572_v37 = vld [vmem:[#allocation10_spill] sm:$0xff] }
  0xbf   :  { %v798_v24 = vmul.f32 %v1604_v40, %v1798_v57  ;;  %v221_v19 = vadd.f32 %v189_v15, %v109_v20  ;;  %v957_v29 = vmax.f32 %v925_v42, 0.0  ;;  %v409_v27 = vmul.f32 %v1836_v13, %v1631_v52  ;;  %v2575_v15 = vld [vmem:[#allocation62_spill] sm:$0xff] }
  0xc0   :  { %v922_v63 = vadd.f32 %v890_v5, %v826_v49  ;;  %v438_v30 = vadd.f32 %v406_v16, %v326_v14  ;;  %v291_v18 = vmul.f32 %v2571_v59, %v1589_v35  ;;  %v188_v62 = vmul.f32 %v2573_v44, %v2564_v7 }
  0xc1   :  { %500 = vadd.xlane.f32.xlu1 %v466_v0  ;;  %986 = vadd.xlane.f32.xlu0 %v953_v58  ;;  %v108_v58 = vmul.f32 %v2572_v37, %v1607_v41  ;;  %v2574_v0 = vld [vmem:[#allocation25_spill] sm:$0xff]  ;;  %v832_v42 = vadd.f32 %v800_v17, %v2575_v15  ;;  %v329_v5 = vadd.f32 %v297_v10, %v1856_v11  ;;  %v2576_v11 = vld [vmem:[#allocation24_spill] sm:$0xff] }
  0xc2   :  { %v644_v20 = vmul.f32 %v2574_v0, %v2572_v37  ;;  %v894_v16 = vmul.f32 %v1628_v51, %v1864_v12  ;;  %v403_v35 = vmul.f32 %v1929_v36, %v1613_v45  ;;  %v830_v25 = vadd.f32 %v798_v24, %v734_v43 }
  0xc3   :  { %v298_v49 = vmul.f32 %v1798_v57, %v1619_v47  ;;  %v215_v14 = vadd.f32 %v183_v54, %v103_v60  ;;  %v954_v7 = vmax.f32 %v922_v63, 0.0  ;;  %v470_v41 = vmax.f32 %v438_v30, 0.0 }
  0xc4   :  { %v928_v33 = vadd.f32 %v896_v9, %v832_v42  ;;  %v801_v17 = vmul.f32 %v2568_v3, %v1762_v8  ;;  %v301_v10 = vmul.f32 %v1762_v8, %v2576_v11  ;;  %v295_v15 = vmul.f32 %v2571_v59, %v2566_v26  ;;  %v2577_v9 = vld [vmem:[#allocation28_spill] sm:$0xff] }
  0xc5   :  { %512 = vadd.xlane.f32.xlu1 %v472_v53  ;;  %994 = vadd.xlane.f32.xlu0 %v957_v29  ;;  %v441_v53 = vadd.f32 %v409_v27, %v329_v5  ;;  %v323_v29 = vadd.f32 %v291_v18, %v211_v1  ;;  %v926_v45 = vadd.f32 %v894_v16, %v830_v25  ;;  %v2578_v18 = vld [vmem:[#allocation26_spill] sm:$0xff] }
  0xc6   :  { %v410_v43 = vmul.f32 %v1864_v12, %v1631_v52  ;;  %v735_v60 = vadd.f32 %v703_v22, %v639_v48  ;;  %v897_v1 = vmul.f32 %v2570_v2, %v1836_v13  ;;  %v413_v24 = vmul.f32 %v1836_v13, %v2577_v9 }
  0xc7   :  { %v435_v54 = vadd.f32 %v403_v35, %v323_v29  ;;  %v407_v63 = vmul.f32 %v1929_v36, %v1616_v46  ;;  %v960_v30 = vmax.f32 %v928_v33, 0.0  ;;  %v473_v27 = vmax.f32 %v441_v53, 0.0 }
  0xc8   :  { %v833_v26 = vadd.f32 %v801_v17, %v1900_v21  ;;  %v333_v48 = vadd.f32 %v301_v10, %v221_v19  ;;  %v327_v22 = vadd.f32 %v295_v15, %v215_v14  ;;  %v708_v42 = vmul.f32 %v2578_v18, %v2573_v44  ;;  %v2579_v14 = vld [vmem:[#allocation29_spill] sm:$0xff]  ;;  %v2580_v17 = vld [vmem:[#allocation15_spill] sm:$0xff] }
  0xc9   :  { %988 = vadd.xlane.f32.xlu1 %v954_v7  ;;  %508 = vadd.xlane.f32.xlu0 %v470_v41  ;;  %v330_v7 = vadd.f32 %v298_v49, %v1897_v6  ;;  %v799_v41 = vmul.f32 %v1604_v40, %v2571_v59  ;;  %v958_v5 = vmax.f32 %v926_v45, 0.0  ;;  %v895_v33 = vmul.f32 %v1628_v51, %v1929_v36  ;;  %v2581_v51 = vld [vmem:[#allocation16_spill] sm:$0xff]  ;;  %v2582_v45 = vld [vmem:[#allocation13_spill] sm:$0xff] }
  0xca   :  { %v300_v46 = vmul.f32 %v1764_v61, %v2576_v11  ;;  %v467_v6 = vmax.f32 %v435_v54, 0.0  ;;  %v929_v35 = vadd.f32 %v897_v1, %v833_v26  ;;  %v445_v40 = vadd.f32 %v413_v24, %v333_v48  ;;  %v2584_v1 = vld [vmem:[#allocation33_spill] sm:$0xff] }
  0xcb   :  { %v442_v16 = vadd.f32 %v410_v43, %v330_v7  ;;  %v439_v25 = vadd.f32 %v407_v63, %v327_v22  ;;  %v831_v21 = vadd.f32 %v799_v41, %v735_v60  ;;  %v220_v19 = vadd.f32 %v188_v62, %v108_v58  ;;  %v2583_v43 = vld [vmem:[#allocation32_spill] sm:$0xff] }
  0xcc   :  { %v412_v49 = vmul.f32 %v1834_v4, %v2577_v9  ;;  %v804_v53 = vmul.f32 %v2579_v14, %v1764_v61  ;;  %v740_v29 = vadd.f32 %v708_v42, %v644_v20  ;;  %v635_v10 = vmul.f32 %v2580_v17, %v1696_v28 }
  0xcd   :  { %1000 = vadd.xlane.f32.xlu1 %v960_v30  ;;  %514 = vadd.xlane.f32.xlu0 %v473_v27  ;;  %v699_v15 = vmul.f32 %v2581_v51, %v1694_v23  ;;  %v1983_v54 = vrot.slane %v2583_v43, %v2582_v45  ;;  %v474_v58 = vmax.f32 %v442_v16, 0.0  ;;  %v927_v62 = vadd.f32 %v895_v33, %v831_v21 }
  0xce   :  { %v332_v60 = vadd.f32 %v300_v46, %v220_v19  ;;  %v900_v24 = vmul.f32 %v2584_v1, %v1834_v4  ;;  %v961_v63 = vmax.f32 %v929_v35, 0.0  ;;  %v477_v20 = vmax.f32 %v445_v40, 0.0  ;;  %v2587_v35 = vld [vmem:[#allocation30_spill] sm:$0xff] }
  0xcf   :  { %v471_v30 = vmax.f32 %v439_v25, 0.0  ;;  %v795_v27 = vmul.f32 %v1601_v39, %v2571_v59  ;;  %v836_v41 = vadd.f32 %v804_v53, %v740_v29  ;;  %v107_v26 = vmul.f32 %v1696_v28, %v1579_v31  ;;  %v2588_v29 = vld [vmem:[#allocation34_spill] sm:$0xff] }
  0xd0   :  { %v444_v7 = vadd.f32 %v412_v49, %v332_v60  ;;  %v187_v48 = vmul.f32 %v1694_v23, %v1582_v32  ;;  %v731_v22 = vadd.f32 %v699_v15, %v635_v10  ;;  %v891_v42 = vmul.f32 %v1625_v50, %v1929_v36 }
  0xd1   :  { %502 = vadd.xlane.f32.xlu1 %v467_v6  ;;  %996 = vadd.xlane.f32.xlu0 %v958_v5  ;;  %v2585_v5 = vld [vmem:[#allocation19_spill] sm:$0xff]  ;;  %v706_v33 = vmul.f32 %v1598_v38, %v1636_v55  ;;  %v959_v39 = vmax.f32 %v927_v62, 0.0  ;;  %v932_v46 = vadd.f32 %v900_v24, %v836_v41  ;;  %v192_v32 = vmul.f32 %v2573_v44, %v2587_v35 }
  0xd2   :  { %v642_v16 = vmul.f32 %v2585_v5, %v1638_v56  ;;  %v2586_v6 = vld [vmem:[#allocation27_spill] sm:$0xff]  ;;  %v827_v40 = vadd.f32 %v795_v27, %v731_v22  ;;  %v299_v50 = vmul.f32 %v2571_v59, %v1619_v47  ;;  %v411_v25 = vmul.f32 %v1929_v36, %v1631_v52  ;;  %v2589_v47 = vld [vmem:[#allocation17_spill] sm:$0xff] }
  0xd3   :  { %v112_v31 = vmul.f32 %v2572_v37, %v2586_v6  ;;  %v802_v21 = vmul.f32 %v2568_v3, %v1798_v57  ;;  %v476_v19 = vmax.f32 %v444_v7, 0.0  ;;  %v219_v49 = vadd.f32 %v187_v48, %v107_v26  ;;  %v2590_v27 = vld [vmem:[#allocation43_spill] sm:$0xff]  ;;  %v2592_v22 = vld [vmem:[#allocation21_spill] sm:$0xff] }
  0xd4   :  { %v898_v53 = vmul.f32 %v2570_v2, %v1864_v12  ;;  %v304_v17 = vmul.f32 %v1764_v61, %v2588_v29  ;;  %v923_v10 = vadd.f32 %v891_v42, %v827_v40  ;;  %v738_v51 = vadd.f32 %v706_v33, %v642_v16  ;;  %v2593_v16 = vld [vmem:[#allocation31_spill] sm:$0xff] }
  0xd5   :  { %516 = vadd.xlane.f32.xlu1 %v474_v58  ;;  %1002 = vadd.xlane.f32.xlu0 %v961_v63  ;;  %v645_v15 = vmul.f32 %v2574_v0, %v1586_v34  ;;  %v709_v43 = vmul.f32 %v2578_v18, %v2589_v47  ;;  %v964_v52 = vmax.f32 %v932_v46, 0.0  ;;  %v224_v58 = vadd.f32 %v192_v32, %v112_v31  ;;  %v2594_v46 = vld [vmem:[#allocation35_spill] sm:$0xff] }
  0xd6   :  { %v643_v62 = vmul.f32 %v2585_v5, %v1696_v28  ;;  %v707_v60 = vmul.f32 %v1598_v38, %v1694_v23  ;;  %v331_v24 = vadd.f32 %v299_v50, %v219_v49  ;;  %v834_v63 = vadd.f32 %v802_v21, %v738_v51 }
  0xd7   :  { %v416_v7 = vmul.f32 %v1834_v4, %v2590_v27  ;;  %v805_v41 = vmul.f32 %v2579_v14, %v1762_v8  ;;  %v336_v26 = vadd.f32 %v304_v17, %v224_v58  ;;  %v190_v42 = vmul.f32 %v1636_v55, %v2592_v22 }
  0xd8   :  { %v741_v5 = vadd.f32 %v709_v43, %v645_v15  ;;  %v901_v38 = vmul.f32 %v2584_v1, %v1836_v13  ;;  %v648_v33 = vmul.f32 %v2593_v16, %v2572_v37  ;;  %v712_v31 = vmul.f32 %v2594_v46, %v2573_v44 }
  0xd9   :  { %522 = vadd.xlane.f32.xlu1 %v477_v20  ;;  %510 = vadd.xlane.f32.xlu0 %v471_v30  ;;  %v803_v20 = vmul.f32 %v2568_v3, %v2571_v59  ;;  %v2591_v30 = vld [vmem:[#allocation20_spill] sm:$0xff]  ;;  %v955_v32 = vmax.f32 %v923_v10, 0.0  ;;  %v739_v3 = vadd.f32 %v707_v60, %v643_v62  ;;  %v899_v40 = vmul.f32 %v2570_v2, %v1929_v36 }
  0xda   :  { %v110_v48 = vmul.f32 %v1638_v56, %v2591_v30  ;;  %v302_v50 = vmul.f32 %v1798_v57, %v2576_v11  ;;  %v443_v21 = vadd.f32 %v411_v25, %v331_v24  ;;  %v930_v49 = vadd.f32 %v898_v53, %v834_v63  ;;  %v2596_v24 = vld [vmem:[#allocation44_spill] sm:$0xff] }
  0xdb   :  { %v448_v17 = vadd.f32 %v416_v7, %v336_v26  ;;  %v837_v51 = vadd.f32 %v805_v41, %v741_v5  ;;  %v835_v15 = vadd.f32 %v803_v20, %v739_v3  ;;  %v414_v58 = vmul.f32 %v1864_v12, %v2577_v9  ;;  %v2597_v20 = vld [vmem:[#allocation37_spill] sm:$0xff]  ;;  %v2599_v3 = vld [vmem:[#allocation11_spill] sm:$0xff] }
  0xdc   :  { %v222_v43 = vadd.f32 %v190_v42, %v110_v48  ;;  %v744_v62 = vadd.f32 %v712_v31, %v648_v33  ;;  %v113_v2 = vmul.f32 %v1586_v34, %v2586_v6  ;;  %v193_v60 = vmul.f32 %v2589_v47, %v2587_v35 }
  0xdd   :  { %998 = vadd.xlane.f32.xlu1 %v959_v39  ;;  %520 = vadd.xlane.f32.xlu0 %v476_v19  ;;  %v2595_v39 = vld [vmem:[#allocation39_spill] sm:$0xff]  ;;  %v933_v10 = vadd.f32 %v901_v38, %v837_v51  ;;  %v931_v25 = vadd.f32 %v899_v40, %v835_v15  ;;  %v904_v63 = vmul.f32 %v2596_v24, %v1834_v4  ;;  %v475_v7 = vmax.f32 %v443_v21, 0.0  ;;  %v2600_v40 = vld [vmem:[#allocation38_spill] sm:$0xff] }
  0xde   :  { %v808_v19 = vmul.f32 %v2595_v39, %v1764_v61  ;;  %v334_v53 = vadd.f32 %v302_v50, %v222_v43  ;;  %v962_v41 = vmax.f32 %v930_v49, 0.0  ;;  %v305_v26 = vmul.f32 %v1762_v8, %v2588_v29 }
  0xdf   :  { %v2055_v48 = vrot.slane %v2597_v20, %v2582_v45  ;;  %v191_v38 = vmul.f32 %v1694_v23, %v2592_v22  ;;  %v480_v33 = vmax.f32 %v448_v17, 0.0  ;;  %v225_v31 = vadd.f32 %v193_v60, %v113_v2  ;;  %v2603_v2 = vld [vmem:[#allocation40_spill] sm:$0xff] }
  0xe0   :  { %v446_v42 = vadd.f32 %v414_v58, %v334_v53  ;;  %v840_v5 = vadd.f32 %v808_v19, %v744_v62  ;;  %v2065_v50 = vrot.slane %v2600_v40, %v2599_v3  ;;  %v965_v21 = vmax.f32 %v933_v10, 0.0  ;;  %v2602_v62 = vld [vmem:[#allocation36_spill] sm:$0xff] }
  0xe1   :  { %1008 = vadd.xlane.f32.xlu1 %v964_v52  ;;  %990 = vadd.xlane.f32.xlu0 %v955_v32  ;;  %2598 = vst [vmem:[#allocation61_spill] sm:$0xff] %v2055_v48  ;;  %v111_v52 = vmul.f32 %v1696_v28, %v2591_v30  ;;  %v417_v32 = vmul.f32 %v1836_v13, %v2590_v27  ;;  %v963_v49 = vmax.f32 %v931_v25, 0.0 }
  0xe2   :  { %2601 = vst [vmem:[#allocation63_spill] sm:$0xff] %v2065_v50  ;;  %v936_v51 = vadd.f32 %v904_v63, %v840_v5  ;;  %v303_v30 = vmul.f32 %v2571_v59, %v2576_v11  ;;  %v337_v15 = vadd.f32 %v305_v26, %v225_v31  ;;  %v415_v22 = vmul.f32 %v1929_v36, %v2577_v9  ;;  %v2604_v5 = vld [vmem:[#allocation48_spill] sm:$0xff] }
  0xe3   :  { %v646_v17 = vmul.f32 %v2574_v0, %v1638_v56  ;;  %v710_v43 = vmul.f32 %v2578_v18, %v1636_v55  ;;  %v478_v58 = vmax.f32 %v446_v42, 0.0  ;;  %v223_v19 = vadd.f32 %v191_v38, %v111_v52  ;;  %v2605_v38 = vld [vmem:[#allocation52_spill] sm:$0xff] }
  0xe4   :  { %v116_v10 = vmul.f32 %v2572_v37, %v2602_v62  ;;  %v196_v60 = vmul.f32 %v2573_v44, %v2603_v2  ;;  %v449_v25 = vadd.f32 %v417_v32, %v337_v15  ;;  %v806_v11 = vmul.f32 %v2579_v14, %v1798_v57 }
  0xe5   :  { %518 = vadd.xlane.f32.xlu1 %v475_v7  ;;  %1004 = vadd.xlane.f32.xlu0 %v962_v41  ;;  %v649_v9 = vmul.f32 %v2593_v16, %v1586_v34  ;;  %v713_v53 = vmul.f32 %v2594_v46, %v2589_v47  ;;  %v968_v63 = vmax.f32 %v936_v51, 0.0  ;;  %v335_v7 = vadd.f32 %v303_v30, %v223_v19 }
  0xe6   :  { %v647_v41 = vmul.f32 %v2574_v0, %v1696_v28  ;;  %v711_v26 = vmul.f32 %v2578_v18, %v1694_v23  ;;  %v742_v20 = vadd.f32 %v710_v43, %v646_v17  ;;  %v902_v42 = vmul.f32 %v2584_v1, %v1864_v12 }
  0xe7   :  { %v308_v52 = vmul.f32 %v1764_v61, %v2604_v5  ;;  %v420_v31 = vmul.f32 %v1834_v4, %v2605_v38  ;;  %v228_v32 = vadd.f32 %v196_v60, %v116_v10  ;;  %v807_v0 = vmul.f32 %v2579_v14, %v2571_v59  ;;  %v2607_v10 = vld [vmem:[#allocation42_spill] sm:$0xff] }
  0xe8   :  { %v838_v51 = vadd.f32 %v806_v11, %v742_v20  ;;  %v745_v18 = vadd.f32 %v713_v53, %v649_v9  ;;  %v114_v30 = vmul.f32 %v1638_v56, %v2586_v6  ;;  %v194_v15 = vmul.f32 %v1636_v55, %v2587_v35  ;;  %v2608_v53 = vld [vmem:[#allocation53_spill] sm:$0xff] }
  0xe9   :  { %528 = vadd.xlane.f32.xlu1 %v480_v33  ;;  %1010 = vadd.xlane.f32.xlu0 %v965_v21  ;;  %v447_v33 = vadd.f32 %v415_v22, %v335_v7  ;;  %v809_v21 = vmul.f32 %v2595_v39, %v1762_v8  ;;  %v481_v17 = vmax.f32 %v449_v25, 0.0  ;;  %v743_v43 = vadd.f32 %v711_v26, %v647_v41  ;;  %v2606_v22 = vld [vmem:[#allocation41_spill] sm:$0xff] }
  0xea   :  { %v652_v19 = vmul.f32 %v2606_v22, %v2572_v37  ;;  %v716_v60 = vmul.f32 %v2607_v10, %v2573_v44  ;;  %v340_v7 = vadd.f32 %v308_v52, %v228_v32  ;;  %v905_v14 = vmul.f32 %v2596_v24, %v1836_v13 }
  0xeb   :  { %v903_v11 = vmul.f32 %v2584_v1, %v1929_v36  ;;  %v306_v9 = vmul.f32 %v1798_v57, %v2588_v29  ;;  %v839_v25 = vadd.f32 %v807_v0, %v743_v43  ;;  %v812_v41 = vmul.f32 %v2608_v53, %v1764_v61 }
  0xec   :  { %v226_v26 = vadd.f32 %v194_v15, %v114_v30  ;;  %v418_v20 = vmul.f32 %v1864_v12, %v2590_v27  ;;  %v117_v52 = vmul.f32 %v1586_v34, %v2602_v62  ;;  %v197_v32 = vmul.f32 %v2589_v47, %v2603_v2 }
  0xed   :  { %1006 = vadd.xlane.f32.xlu1 %v963_v49  ;;  %524 = vadd.xlane.f32.xlu0 %v478_v58  ;;  %v934_v49 = vadd.f32 %v902_v42, %v838_v51  ;;  %v841_v58 = vadd.f32 %v809_v21, %v745_v18  ;;  %v479_v1 = vmax.f32 %v447_v33, 0.0  ;;  %v748_v50 = vadd.f32 %v716_v60, %v652_v19  ;;  %v2609_v42 = vld [vmem:[#allocation56_spill] sm:$0xff] }
  0xee   :  { %v908_v21 = vmul.f32 %v2609_v42, %v1834_v4  ;;  %v2125_v0 = vrot.slane %v2600_v40, %v2582_v45  ;;  %v452_v51 = vadd.f32 %v420_v31, %v340_v7  ;;  %v935_v30 = vadd.f32 %v903_v11, %v839_v25 }
  0xef   :  { %v937_v18 = vadd.f32 %v905_v14, %v841_v58  ;;  %v338_v15 = vadd.f32 %v306_v9, %v226_v26  ;;  %v966_v43 = vmax.f32 %v934_v49, 0.0  ;;  %v844_v3 = vadd.f32 %v812_v41, %v748_v50 }
  0xf0   :  { %v309_v48 = vmul.f32 %v1762_v8, %v2604_v5  ;;  %v115_v19 = vmul.f32 %v1696_v28, %v2586_v6  ;;  %v195_v40 = vmul.f32 %v1694_v23, %v2587_v35  ;;  %v650_v50 = vmul.f32 %v2593_v16, %v1638_v56  ;;  %v2610_v35 = vld [vmem:[#allocation45_spill] sm:$0xff] }
  0xf1   :  { %1016 = vadd.xlane.f32.xlu1 %v968_v63  ;;  %530 = vadd.xlane.f32.xlu0 %v481_v17  ;;  %v421_v63 = vmul.f32 %v1836_v13, %v2605_v38  ;;  %v450_v33 = vadd.f32 %v418_v20, %v338_v15  ;;  %v229_v17 = vadd.f32 %v197_v32, %v117_v52  ;;  %v484_v7 = vmax.f32 %v452_v51, 0.0 }
  0xf2   :  { %v940_v31 = vadd.f32 %v908_v21, %v844_v3  ;;  %v714_v60 = vmul.f32 %v2594_v46, %v1636_v55  ;;  %v969_v14 = vmax.f32 %v937_v18, 0.0  ;;  %v967_v11 = vmax.f32 %v935_v30, 0.0  ;;  %v2611_v3 = vld [vmem:[#allocation46_spill] sm:$0xff] }
  0xf3   :  { %v307_v9 = vmul.f32 %v2571_v59, %v2588_v29  ;;  %v341_v49 = vadd.f32 %v309_v48, %v229_v17  ;;  %v810_v6 = vmul.f32 %v2595_v39, %v1798_v57  ;;  %v120_v58 = vmul.f32 %v2572_v37, %v2610_v35 }
  0xf4   :  { %v200_v25 = vmul.f32 %v2573_v44, %v2611_v3  ;;  %v482_v41 = vmax.f32 %v450_v33, 0.0  ;;  %v227_v26 = vadd.f32 %v195_v40, %v115_v19  ;;  %v419_v20 = vmul.f32 %v1929_v36, %v2590_v27 }
  0xf5   :  { %526 = vadd.xlane.f32.xlu1 %v479_v1  ;;  %1012 = vadd.xlane.f32.xlu0 %v966_v43  ;;  %v906_v52 = vmul.f32 %v2596_v24, %v1864_v12  ;;  %v972_v29 = vmax.f32 %v940_v31, 0.0  ;;  %v453_v48 = vadd.f32 %v421_v63, %v341_v49  ;;  %v746_v32 = vadd.f32 %v714_v60, %v650_v50  ;;  %v2612_v1 = vld [vmem:[#allocation54_spill] sm:$0xff] }
  0xf6   :  { %v312_v21 = vmul.f32 %v1764_v61, %v2612_v1  ;;  %v653_v51 = vmul.f32 %v2606_v22, %v1586_v34  ;;  %v717_v18 = vmul.f32 %v2607_v10, %v2589_v47  ;;  %v651_v27 = vmul.f32 %v2593_v16, %v1696_v28 }
  0xf7   :  { %v715_v30 = vmul.f32 %v2594_v46, %v1694_v23  ;;  %v339_v15 = vadd.f32 %v307_v9, %v227_v26  ;;  %v842_v43 = vadd.f32 %v810_v6, %v746_v32  ;;  %v232_v33 = vadd.f32 %v200_v25, %v120_v58  ;;  %v2613_v58 = vld [vmem:[#allocation49_spill] sm:$0xff]  ;;  %v2614_v25 = vld [vmem:[#allocation50_spill] sm:$0xff] }
  0xf8   :  { %v424_v63 = vmul.f32 %v1834_v4, %v1983_v54  ;;  %v813_v17 = vmul.f32 %v2608_v53, %v1762_v8  ;;  %v811_v19 = vmul.f32 %v2595_v39, %v2571_v59  ;;  %v118_v40 = vmul.f32 %v1638_v56, %v2602_v62 }
  0xf9   :  { %536 = vadd.xlane.f32.xlu1 %v484_v7  ;;  %1018 = vadd.xlane.f32.xlu0 %v969_v14  ;;  %v198_v16 = vmul.f32 %v1636_v55, %v2603_v2  ;;  %v485_v46 = vmax.f32 %v453_v48, 0.0  ;;  %v451_v31 = vadd.f32 %v419_v20, %v339_v15  ;;  %v344_v50 = vadd.f32 %v312_v21, %v232_v33  ;;  %v2616_v15 = vld [vmem:[#allocation61_spill] sm:$0xff] }
  0xfa   :  { %v909_v60 = vmul.f32 %v2609_v42, %v1836_v13  ;;  %v938_v7 = vadd.f32 %v906_v52, %v842_v43  ;;  %v749_v14 = vadd.f32 %v717_v18, %v653_v51  ;;  %v747_v9 = vadd.f32 %v715_v30, %v651_v27 }
  0xfb   :  { %v907_v39 = vmul.f32 %v2596_v24, %v1929_v36  ;;  %v456_v49 = vadd.f32 %v424_v63, %v344_v50  ;;  %v310_v6 = vmul.f32 %v1798_v57, %v2604_v5  ;;  %v230_v48 = vadd.f32 %v198_v16, %v118_v40  ;;  %v2615_v24 = vld [vmem:[#allocation58_spill] sm:$0xff] }
  0xfc   :  { %v845_v26 = vadd.f32 %v813_v17, %v749_v14  ;;  %v843_v20 = vadd.f32 %v811_v19, %v747_v9  ;;  %v422_v52 = vmul.f32 %v1864_v12, %v2605_v38  ;;  %v816_v32 = vmul.f32 %v2615_v24, %v1764_v61 }
  0xfd   :  { %1014 = vadd.xlane.f32.xlu1 %v967_v11  ;;  %532 = vadd.xlane.f32.xlu0 %v482_v41  ;;  %v656_v11 = vmul.f32 %v2613_v58, %v2572_v37  ;;  %v720_v41 = vmul.f32 %v2614_v25, %v2573_v44  ;;  %v121_v21 = vmul.f32 %v1586_v34, %v2610_v35  ;;  %v483_v18 = vmax.f32 %v451_v31, 0.0  ;;  %v2618_v31 = vld [vmem:[#allocation47_spill] sm:$0xff] }
  0xfe   :  { %v201_v51 = vmul.f32 %v2589_v47, %v2611_v3  ;;  %v970_v27 = vmax.f32 %v938_v7, 0.0  ;;  %v941_v30 = vadd.f32 %v909_v60, %v845_v26  ;;  %v912_v43 = vmul.f32 %v2616_v15, %v1834_v4 }
  0xff   :  { %v939_v33 = vadd.f32 %v907_v39, %v843_v20  ;;  %v342_v63 = vadd.f32 %v310_v6, %v230_v48  ;;  %v752_v17 = vadd.f32 %v720_v41, %v656_v11  ;;  %v425_v19 = vmul.f32 %v1836_v13, %v1983_v54 }
 0x100   :  { %v119_v40 = vmul.f32 %v1696_v28, %v2602_v62  ;;  %v199_v16 = vmul.f32 %v1694_v23, %v2603_v2  ;;  %v488_v60 = vmax.f32 %v456_v49, 0.0  ;;  %v233_v9 = vadd.f32 %v201_v51, %v121_v21 }
 0x101   :  { %1024 = vadd.xlane.f32.xlu1 %v972_v29  ;;  %538 = vadd.xlane.f32.xlu0 %v485_v46  ;;  %v313_v29 = vmul.f32 %v1762_v8, %v2612_v1  ;;  %v2617_v46 = vld [vmem:[#allocation11_spill] sm:$0xff]  ;;  %v454_v7 = vadd.f32 %v422_v52, %v342_v63  ;;  %v848_v14 = vadd.f32 %v816_v32, %v752_v17  ;;  %v973_v39 = vmax.f32 %v941_v30, 0.0 }
 0x102   :  { %v2201_v50 = vrot.slane %v2618_v31, %v2617_v46  ;;  %v311_v6 = vmul.f32 %v2571_v59, %v2604_v5  ;;  %v654_v62 = vmul.f32 %v2606_v22, %v1638_v56  ;;  %v718_v2 = vmul.f32 %v2607_v10, %v1636_v55  ;;  %v2619_v52 = vld [vmem:[#allocation51_spill] sm:$0xff] }
 0x103   :  { %v971_v11 = vmax.f32 %v939_v33, 0.0  ;;  %v944_v41 = vadd.f32 %v912_v43, %v848_v14  ;;  %v345_v26 = vadd.f32 %v313_v29, %v233_v9  ;;  %v423_v20 = vmul.f32 %v1929_v36, %v2605_v38  ;;  %v2620_v5 = vld [vmem:[#allocation55_spill] sm:$0xff] }
 0x104   :  { %v231_v49 = vadd.f32 %v199_v16, %v119_v40  ;;  %v814_v48 = vmul.f32 %v2608_v53, %v1798_v57  ;;  %v124_v32 = vmul.f32 %v2572_v37, %v2619_v52  ;;  %v204_v21 = vmul.f32 %v2573_v44, %v2620_v5  ;;  %v2621_v63 = vld [vmem:[#allocation63_spill] sm:$0xff] }
 0x105   :  { %534 = vadd.xlane.f32.xlu1 %v483_v18  ;;  %1020 = vadd.xlane.f32.xlu0 %v970_v27  ;;  %v486_v51 = vmax.f32 %v454_v7, 0.0  ;;  %v457_v18 = vadd.f32 %v425_v19, %v345_v26  ;;  %v657_v27 = vmul.f32 %v2613_v58, %v1586_v34  ;;  %v721_v38 = vmul.f32 %v2614_v25, %v2589_v47 }
 0x106   :  { %v343_v30 = vadd.f32 %v311_v6, %v231_v49  ;;  %v750_v43 = vadd.f32 %v718_v2, %v654_v62  ;;  %v910_v33 = vmul.f32 %v2609_v42, %v1864_v12  ;;  %v316_v17 = vmul.f32 %v1764_v61, %v2621_v63  ;;  %v2622_v49 = vld [vmem:[#allocation57_spill] sm:$0xff] }
 0x107   :  { %v976_v29 = vmax.f32 %v944_v41, 0.0  ;;  %v428_v40 = vmul.f32 %v1834_v4, %v2125_v0  ;;  %v655_v19 = vmul.f32 %v2606_v22, %v1696_v28  ;;  %v719_v16 = vmul.f32 %v2607_v10, %v1694_v23 }
 0x108   :  { %v455_v46 = vadd.f32 %v423_v20, %v343_v30  ;;  %v236_v7 = vadd.f32 %v204_v21, %v124_v32  ;;  %v817_v14 = vmul.f32 %v2615_v24, %v1762_v8  ;;  %v489_v9 = vmax.f32 %v457_v18, 0.0 }
 0x109   :  { %544 = vadd.xlane.f32.xlu1 %v488_v60  ;;  %1026 = vadd.xlane.f32.xlu0 %v973_v39  ;;  %v846_v60 = vadd.f32 %v814_v48, %v750_v43  ;;  %v753_v39 = vadd.f32 %v721_v38, %v657_v27  ;;  %v913_v6 = vmul.f32 %v2616_v15, %v1836_v13 }
 0x10a   :  { %v815_v62 = vmul.f32 %v2608_v53, %v2571_v59  ;;  %v348_v2 = vadd.f32 %v316_v17, %v236_v7  ;;  %v122_v10 = vmul.f32 %v1638_v56, %v2610_v35  ;;  %v202_v41 = vmul.f32 %v1636_v55, %v2611_v3  ;;  %v2623_v53 = vld [vmem:[#allocation59_spill] sm:$0xff] }
 0x10b   :  { %v942_v22 = vadd.f32 %v910_v33, %v846_v60  ;;  %v751_v26 = vadd.f32 %v719_v16, %v655_v19  ;;  %v314_v20 = vmul.f32 %v1798_v57, %v2612_v1  ;;  %v660_v48 = vmul.f32 %v2622_v49, %v2572_v37 }
 0x10c   :  { %v724_v32 = vmul.f32 %v2623_v53, %v2573_v44  ;;  %v2251_v21 = vrot.slane %v2618_v31, %v2582_v45  ;;  %v205_v18 = vmul.f32 %v2589_v47, %v2620_v5  ;;  %v849_v27 = vadd.f32 %v817_v14, %v753_v39 }
 0x10d   :  { %1022 = vadd.xlane.f32.xlu1 %v971_v11  ;;  %540 = vadd.xlane.f32.xlu0 %v486_v51  ;;  %v911_v11 = vmul.f32 %v2609_v42, %v1929_v36  ;;  %v125_v51 = vmul.f32 %v1586_v34, %v2619_v52  ;;  %v487_v42 = vmax.f32 %v455_v46, 0.0  ;;  %v847_v38 = vadd.f32 %v815_v62, %v751_v26 }
 0x10e   :  { %v974_v30 = vmax.f32 %v942_v22, 0.0  ;;  %v460_v37 = vadd.f32 %v428_v40, %v348_v2  ;;  %v234_v43 = vadd.f32 %v202_v41, %v122_v10  ;;  %v820_v44 = vmul.f32 %v2201_v50, %v1764_v61 }
 0x10f   :  { %v945_v33 = vadd.f32 %v913_v6, %v849_v27  ;;  %v943_v45 = vadd.f32 %v911_v11, %v847_v38  ;;  %v426_v31 = vmul.f32 %v1864_v12, %v1983_v54  ;;  %v317_v17 = vmul.f32 %v1762_v8, %v2621_v63 }
 0x110   :  { %v346_v19 = vadd.f32 %v314_v20, %v234_v43  ;;  %v916_v16 = vmul.f32 %v2251_v21, %v1834_v4  ;;  %v237_v46 = vadd.f32 %v205_v18, %v125_v51  ;;  %v429_v40 = vmul.f32 %v1836_v13, %v2125_v0 }
 0x111   :  { %1032 = vadd.xlane.f32.xlu1 %v976_v29  ;;  %546 = vadd.xlane.f32.xlu0 %v489_v9  ;;  %v756_v29 = vadd.f32 %v724_v32, %v660_v48  ;;  %v123_v61 = vmul.f32 %v1696_v28, %v2610_v35  ;;  %v203_v60 = vmul.f32 %v1694_v23, %v2611_v3  ;;  %v492_v7 = vmax.f32 %v460_v37, 0.0 }
 0x112   :  { %v658_v9 = vmul.f32 %v2613_v58, %v1638_v56  ;;  %v722_v4 = vmul.f32 %v2614_v25, %v1636_v55  ;;  %v977_v39 = vmax.f32 %v945_v33, 0.0  ;;  %v458_v6 = vadd.f32 %v426_v31, %v346_v19 }
 0x113   :  { %v852_v14 = vadd.f32 %v820_v44, %v756_v29  ;;  %v349_v62 = vadd.f32 %v317_v17, %v237_v46  ;;  %v315_v22 = vmul.f32 %v2571_v59, %v2612_v1  ;;  %v818_v35 = vmul.f32 %v2615_v24, %v1798_v57 }
 0x114   :  { %v975_v3 = vmax.f32 %v943_v45, 0.0  ;;  %v235_v41 = vadd.f32 %v203_v60, %v123_v61  ;;  %v427_v26 = vmul.f32 %v1929_v36, %v1983_v54  ;;  %v754_v11 = vadd.f32 %v722_v4, %v658_v9 }
 0x115   :  { %542 = vadd.xlane.f32.xlu1 %v487_v42  ;;  %1028 = vadd.xlane.f32.xlu0 %v974_v30  ;;  %v948_v2 = vadd.f32 %v916_v16, %v852_v14  ;;  %v461_v10 = vadd.f32 %v429_v40, %v349_v62  ;;  %v914_v20 = vmul.f32 %v2616_v15, %v1864_v12  ;;  %v490_v32 = vmax.f32 %v458_v6, 0.0 }
 0x116   :  { %v659_v48 = vmul.f32 %v2613_v58, %v1696_v28  ;;  %v723_v1 = vmul.f32 %v2614_v25, %v1694_v23  ;;  %v347_v51 = vadd.f32 %v315_v22, %v235_v41  ;;  %v661_v18 = vmul.f32 %v2622_v49, %v1586_v34 }
 0x117   :  { %v725_v42 = vmul.f32 %v2623_v53, %v2589_v47  ;;  %v980_v27 = vmax.f32 %v948_v2, 0.0  ;;  %v850_v54 = vadd.f32 %v818_v35, %v754_v11  ;;  %v819_v38 = vmul.f32 %v2615_v24, %v2571_v59 }
 0x118   :  { %v493_v30 = vmax.f32 %v461_v10, 0.0  ;;  %v459_v58 = vadd.f32 %v427_v26, %v347_v51  ;;  %v915_v25 = vmul.f32 %v2616_v15, %v1929_v36  ;;  %v821_v37 = vmul.f32 %v2201_v50, %v1762_v8 }
 0x119   :  { %552 = vadd.xlane.f32.xlu1 %v492_v7  ;;  %1034 = vadd.xlane.f32.xlu0 %v977_v39  ;;  %v946_v43 = vadd.f32 %v914_v20, %v850_v54  ;;  %v755_v34 = vadd.f32 %v723_v1, %v659_v48  ;;  %v127_v47 = vmul.f32 %v1696_v28, %v2619_v52  ;;  %v1082_v20 = vld [vmem:[%s2434_s2 + $0x10] sm:$0xff]  ;;  %v1083_v48 = vld [vmem:[%s2434_s2 + $0x18] sm:$0xff] }
 0x11a   :  { %v207_v44 = vmul.f32 %v1694_v23, %v2620_v5  ;;  %v757_v33 = vadd.f32 %v725_v42, %v661_v18  ;;  %v917_v24 = vmul.f32 %v2251_v21, %v1836_v13  ;;  %v126_v45 = vmul.f32 %v1638_v56, %v2619_v52 }
 0x11b   :  { %v206_v15 = vmul.f32 %v1636_v55, %v2620_v5  ;;  %v851_v31 = vadd.f32 %v819_v38, %v755_v34  ;;  %v319_v8 = vmul.f32 %v2571_v59, %v2621_v63  ;;  %v491_v17 = vmax.f32 %v459_v58, 0.0 }
 0x11c   :  { %v853_v19 = vadd.f32 %v821_v37, %v757_v33  ;;  %v431_v29 = vmul.f32 %v1929_v36, %v2125_v0  ;;  %v318_v13 = vmul.f32 %v1798_v57, %v2621_v63  ;;  %v978_v16 = vmax.f32 %v946_v43, 0.0  ;;  %v2625_v37 = vld [vmem:[#allocation8_spill] sm:$0xff] }
 0x11d   :  { %1030 = vadd.xlane.f32.xlu1 %v975_v3  ;;  %548 = vadd.xlane.f32.xlu0 %v490_v32  ;;  %v947_v46 = vadd.f32 %v915_v25, %v851_v31  ;;  %v239_v52 = vadd.f32 %v207_v44, %v127_v47  ;;  %v430_v5 = vmul.f32 %v1864_v12, %v2125_v0  ;;  %v1484_v18 = vmov 0.0  }
 0x11e   :  { %v949_v40 = vadd.f32 %v917_v24, %v853_v19  ;;  %v238_v61 = vadd.f32 %v206_v15, %v126_v45  ;;  %v662_v60 = vmul.f32 %v2622_v49, %v1638_v56  ;;  %v726_v7 = vmul.f32 %v2623_v53, %v1636_v55  ;;  %1401 = vmatprep.mubr.msk.f32.mxu0 %vm1483_vm0, %v1484_v18 }
 0x11f   :  { %v351_v14 = vadd.f32 %v319_v8, %v239_v52  ;;  %v822_v63 = vmul.f32 %v2201_v50, %v1798_v57  ;;  %v979_v4 = vmax.f32 %v947_v46, 0.0  ;;  %v918_v0 = vmul.f32 %v2251_v21, %v1864_v12 }
 0x120   :  { %v350_v9 = vadd.f32 %v318_v13, %v238_v61  ;;  %v663_v6 = vmul.f32 %v2622_v49, %v1696_v28  ;;  %v981_v62 = vmax.f32 %v949_v40, 0.0  ;;  %v758_v22 = vadd.f32 %v726_v7, %v662_v60 }
 0x121   :  { %1040 = vadd.xlane.f32.xlu1 %v980_v27  ;;  %554 = vadd.xlane.f32.xlu0 %v493_v30  ;;  %v463_v39 = vadd.f32 %v431_v29, %v351_v14  ;;  %v727_v55 = vmul.f32 %v2623_v53, %v1694_v23  ;;  %v823_v57 = vmul.f32 %v2201_v50, %v2571_v59  ;;  %v1080_v59 = vld [vmem:[%s2434_s2] sm:$0xff]  ;;  %v1482_v50 = vmov 0.0|0.0  }
 0x122   :  { %v462_v56 = vadd.f32 %v430_v5, %v350_v9  ;;  %v854_v2 = vadd.f32 %v822_v63, %v758_v22  ;;  %v919_v35 = vmul.f32 %v2251_v21, %v1929_v36  ;;  %v1081_v36 = vld [vmem:[%s2434_s2 + $0x8] sm:$0xff]  ;;  %1404 = vmatprep.subr.bf16.mxu0 %v1482_v50  ;;  %v1408_v51 = vpack.c.bf16 %v1083_v48, %v1082_v20 }
 0x123   :  { %v495_v3 = vmax.f32 %v463_v39, 0.0  ;;  %v759_v41 = vadd.f32 %v727_v55, %v663_v6  ;;  %v1405_v21 = vpack.c.bf16 %v1081_v36, %v1080_v59  ;;  %v2624_v42 = vlaneseq }
 0x124   :  { %v494_v12 = vmax.f32 %v462_v56, 0.0  ;;  %v950_v10 = vadd.f32 %v918_v0, %v854_v2 }
 0x125   :  { %550 = vadd.xlane.f32.xlu1 %v491_v17  ;;  %1036 = vadd.xlane.f32.xlu0 %v978_v16  ;;  %v855_v28 = vadd.f32 %v823_v57, %v759_v41  ;;  %v1124_v27 = vand.u32 127, %v2624_v42 }
 0x126   :  { %v982_v49 = vmax.f32 %v950_v10, 0.0  ;;  %1406 = vmatpush3.bf16.msra.mxu0 %v1405_v21 }
 0x127   :  { %v951_v26 = vadd.f32 %v919_v35, %v855_v28  ;;  %1407 = vmatprep.subr.bf16.mxu0 %v1482_v50  ;;  %v1129_v38 = vadd.s32 4294967288, %v1124_v27  ;;  %v2345_v43 = vsub.s32 %v1124_v27, %v2625_v37  ;;  %v1136_v15 = vadd.s32 4294967280, %v1124_v27 }
 0x128   :  { %v1143_v57 = vadd.s32 4294967272, %v1124_v27 }
 0x129   :  { %1038 = vadd.xlane.f32.xlu1 %v979_v4  ;;  %1042 = vadd.xlane.f32.xlu0 %v981_v62  ;;  %v983_v23 = vmax.f32 %v951_v26, 0.0  ;;  %v2348_v34 = vsub.s32 %v1129_v38, %v2625_v37  ;;  %v2356_v16 = vsub.s32 %v1136_v15, %v2625_v37 }
 0x12a   :  { %1409 = vmatpush3.bf16.msra.mxu0 %v1408_v51  ;;  %v2367_v10 = vsub.s32 %v1143_v57, %v2625_v37 }
 0x12d   :  { %558 = vadd.xlane.f32.xlu1 %v495_v3  ;;  %556 = vadd.xlane.f32.xlu0 %v494_v12 }
 0x131   :  { %1044 = vadd.xlane.f32.xlu0 %v982_v49 }
 0x135   :  { %1046 = vadd.xlane.f32.xlu0 %v983_v23 }
 0x142   :  { %v499_v53 = vpop.xlane.xlu1 %498  ;;  %v497_v11 = vpop.xlane.xlu0 %496 }
 0x146   :  { %v985_v1 = vpop.xlane.xlu1 %984  ;;  %v505_v32 = vpop.xlane.xlu0 %504 }
 0x147   :  { %v1048_v54 = vadd.f32 %v985_v1, %v497_v11 }
 0x149   :  { %v1128_v24 = vrot.slane %v1048_v54, %v2345_v43 }
 0x14a   :  { %v993_v30 = vpop.xlane.xlu1 %992  ;;  %v507_v58 = vpop.xlane.xlu0 %506 }
 0x14b   :  { %v1052_v25 = vadd.f32 %v993_v30, %v505_v32 }
 0x14d   :  { %v1153_v29 = vrot.slane %v1052_v25, %v2345_v43 }
 0x14e   :  { %v501_v47 = vpop.xlane.xlu1 %500  ;;  %v987_v44 = vpop.xlane.xlu0 %986 }
 0x14f   :  { %v1049_v33 = vadd.f32 %v987_v44, %v499_v53 }
 0x151   :  { %v1133_v45 = vrot.slane %v1049_v33, %v2348_v34 }
 0x152   :  { %v513_v31 = vpop.xlane.xlu1 %512  ;;  %v995_v8 = vpop.xlane.xlu0 %994 }
 0x153   :  { %v1135_v17 = vsel %vm1134_vm1, %v1133_v45, %v1128_v24  ;;  %v1053_v19 = vadd.f32 %v995_v8, %v507_v58 }
 0x155   :  { %v1157_v13 = vrot.slane %v1053_v19, %v2348_v34 }
 0x156   :  { %v989_v46 = vpop.xlane.xlu1 %988  ;;  %v509_v52 = vpop.xlane.xlu0 %508 }
 0x157   :  { %v1158_v5 = vsel %vm1134_vm1, %v1157_v13, %v1153_v29  ;;  %v1050_v40 = vadd.f32 %v989_v46, %v501_v47 }
 0x159   :  { %v1140_v61 = vrot.slane %v1050_v40, %v2356_v16 }
 0x15a   :  { %v1001_v60 = vpop.xlane.xlu1 %1000  ;;  %v515_v7 = vpop.xlane.xlu0 %514 }
 0x15b   :  { %v1142_v14 = vsel %vm1141_vm2, %v1140_v61, %v1135_v17  ;;  %v1056_v9 = vadd.f32 %v1001_v60, %v513_v31 }
 0x15d   :  { %v1172_v55 = vrot.slane %v1056_v9, %v2345_v43 }
 0x15e   :  { %v503_v63 = vpop.xlane.xlu1 %502  ;;  %v997_v4 = vpop.xlane.xlu0 %996 }
 0x15f   :  { %v1054_v39 = vadd.f32 %v997_v4, %v509_v52 }
 0x161   :  { %v1162_v0 = vrot.slane %v1054_v39, %v2356_v16 }
 0x162   :  { %v517_v6 = vpop.xlane.xlu1 %516  ;;  %v1003_v62 = vpop.xlane.xlu0 %1002 }
 0x163   :  { %v1163_v56 = vsel %vm1141_vm2, %v1162_v0, %v1158_v5  ;;  %v1057_v22 = vadd.f32 %v1003_v62, %v515_v7 }
 0x165   :  { %v1176_v2 = vrot.slane %v1057_v22, %v2348_v34 }
 0x166   :  { %v523_v35 = vpop.xlane.xlu1 %522  ;;  %v511_v3 = vpop.xlane.xlu0 %510 }
 0x167   :  { %v1177_v12 = vsel %vm1134_vm1, %v1176_v2, %v1172_v55 }
 0x16a   :  { %v999_v41 = vpop.xlane.xlu1 %998  ;;  %v521_v28 = vpop.xlane.xlu0 %520 }
 0x16b   :  { %v1055_v49 = vadd.f32 %v999_v41, %v511_v3 }
 0x16d   :  { %v1167_v26 = vrot.slane %v1055_v49, %v2367_v10 }
 0x16e   :  { %v1009_v23 = vpop.xlane.xlu1 %1008  ;;  %v991_v53 = vpop.xlane.xlu0 %990 }
 0x16f   :  { %v1168_v11 = vsel %vm1148_vm3, %v1167_v26, %v1163_v56  ;;  %v1060_v59 = vadd.f32 %v1009_v23, %v521_v28  ;;  %v1051_v36 = vadd.f32 %v991_v53, %v503_v63 }
 0x171   :  { %v1147_v50 = vrot.slane %v1051_v36, %v2367_v10  ;;  %v1191_v38 = vrot.slane %v1060_v59, %v2345_v43 }
 0x172   :  { %v519_v21 = vpop.xlane.xlu1 %518  ;;  %v1005_v20 = vpop.xlane.xlu0 %1004 }
 0x173   :  { %v1149_v48 = vsel %vm1148_vm3, %v1147_v50, %v1142_v14  ;;  %v1058_v1 = vadd.f32 %v1005_v20, %v517_v6 }
 0x174   :  { %v1284_v32 = vsel %vm1283_vm4, %v1168_v11, %v1149_v48 }
 0x175   :  { %v1181_v51 = vrot.slane %v1058_v1, %v2356_v16 }
 0x176   :  { %v529_v18 = vpop.xlane.xlu1 %528  ;;  %v1011_v42 = vpop.xlane.xlu0 %1010 }
 0x177   :  { %v1182_v27 = vsel %vm1141_vm2, %v1181_v51, %v1177_v12  ;;  %v1061_v54 = vadd.f32 %v1011_v42, %v523_v35 }
 0x179   :  { %v1195_v30 = vrot.slane %v1061_v54, %v2348_v34 }
 0x17a   :  { %v1007_v58 = vpop.xlane.xlu1 %1006  ;;  %v525_v25 = vpop.xlane.xlu0 %524 }
 0x17b   :  { %v1196_v37 = vsel %vm1134_vm1, %v1195_v30, %v1191_v38  ;;  %v1059_v47 = vadd.f32 %v1007_v58, %v519_v21 }
 0x17d   :  { %v1186_v44 = vrot.slane %v1059_v47, %v2367_v10 }
 0x17e   :  { %v1017_v33 = vpop.xlane.xlu1 %1016  ;;  %v531_v24 = vpop.xlane.xlu0 %530 }
 0x17f   :  { %v1187_v45 = vsel %vm1148_vm3, %v1186_v44, %v1182_v27  ;;  %v1064_v11 = vadd.f32 %v1017_v33, %v529_v18 }
 0x180   :  { %v1286_v15 = vsel %vm1285_vm5, %v1187_v45, %v1284_v32 }
 0x181   :  { %v1210_v30 = vrot.slane %v1064_v11, %v2345_v43 }
 0x182   :  { %v527_v31 = vpop.xlane.xlu1 %526  ;;  %v1013_v8 = vpop.xlane.xlu0 %1012 }
 0x183   :  { %v1062_v17 = vadd.f32 %v1013_v8, %v525_v25 }
 0x185   :  { %v1200_v19 = vrot.slane %v1062_v17, %v2356_v16 }
 0x186   :  { %v537_v29 = vpop.xlane.xlu1 %536  ;;  %v1019_v13 = vpop.xlane.xlu0 %1018 }
 0x187   :  { %v1201_v46 = vsel %vm1141_vm2, %v1200_v19, %v1196_v37  ;;  %v1065_v53 = vadd.f32 %v1019_v13, %v531_v24 }
 0x189   :  { %v1214_v27 = vrot.slane %v1065_v53, %v2348_v34 }
 0x18a   :  { %v1015_v52 = vpop.xlane.xlu1 %1014  ;;  %v533_v5 = vpop.xlane.xlu0 %532 }
 0x18b   :  { %v1063_v40 = vadd.f32 %v1015_v52, %v527_v31  ;;  %v1215_v17 = vsel %vm1134_vm1, %v1214_v27, %v1210_v30 }
 0x18d   :  { %v1205_v61 = vrot.slane %v1063_v40, %v2367_v10 }
 0x18e   :  { %v1025_v60 = vpop.xlane.xlu1 %1024  ;;  %v539_v7 = vpop.xlane.xlu0 %538 }
 0x18f   :  { %v1206_v14 = vsel %vm1148_vm3, %v1205_v61, %v1201_v46  ;;  %v1068_v21 = vadd.f32 %v1025_v60, %v537_v29 }
 0x190   :  { %v2384_v9 = vsel %vm1287_vm6, %v1206_v14, %v1286_v15 }
 0x191   :  { %v1229_v37 = vrot.slane %v1068_v21, %v2345_v43 }
 0x192   :  { %v535_v63 = vpop.xlane.xlu1 %534  ;;  %v1021_v4 = vpop.xlane.xlu0 %1020 }
 0x193   :  { %v1066_v59 = vadd.f32 %v1021_v4, %v533_v5 }
 0x195   :  { %v1219_v58 = vrot.slane %v1066_v59, %v2356_v16 }
 0x196   :  { %v545_v39 = vpop.xlane.xlu1 %544  ;;  %v1027_v0 = vpop.xlane.xlu0 %1026 }
 0x197   :  { %v1069_v36 = vadd.f32 %v1027_v0, %v539_v7  ;;  %v1220_v13 = vsel %vm1141_vm2, %v1219_v58, %v1215_v17 }
 0x199   :  { %v1233_v18 = vrot.slane %v1069_v36, %v2348_v34 }
 0x19a   :  { %v1023_v6 = vpop.xlane.xlu1 %1022  ;;  %v541_v62 = vpop.xlane.xlu0 %540 }
 0x19b   :  { %v1067_v20 = vadd.f32 %v1023_v6, %v535_v63  ;;  %v1234_v46 = vsel %vm1134_vm1, %v1233_v18, %v1229_v37 }
 0x19d   :  { %v1224_v47 = vrot.slane %v1067_v20, %v2367_v10 }
 0x19e   :  { %v1033_v56 = vpop.xlane.xlu1 %1032  ;;  %v547_v22 = vpop.xlane.xlu0 %546 }
 0x19f   :  { %v1072_v54 = vadd.f32 %v1033_v56, %v545_v39  ;;  %v1225_v5 = vsel %vm1148_vm3, %v1224_v47, %v1220_v13 }
 0x1a0   :  { %v1290_v6 = vsel %vm1289_vm7, %v1225_v5, %v2384_v9 }
 0x1a1   :  { %v1248_v19 = vrot.slane %v1072_v54, %v2345_v43 }
 0x1a2   :  { %v543_v55 = vpop.xlane.xlu1 %542  ;;  %v1029_v2 = vpop.xlane.xlu0 %1028 }
 0x1a3   :  { %v1070_v48 = vadd.f32 %v1029_v2, %v541_v62 }
 0x1a5   :  { %v1238_v44 = vrot.slane %v1070_v48, %v2356_v16 }
 0x1a6   :  { %v553_v57 = vpop.xlane.xlu1 %552  ;;  %v1035_v35 = vpop.xlane.xlu0 %1034 }
 0x1a7   :  { %v1073_v1 = vadd.f32 %v1035_v35, %v547_v22  ;;  %v1239_v40 = vsel %vm1141_vm2, %v1238_v44, %v1234_v46 }
 0x1a9   :  { %v1252_v33 = vrot.slane %v1073_v1, %v2348_v34 }
 0x1aa   :  { %v1031_v3 = vpop.xlane.xlu1 %1030  ;;  %v549_v12 = vpop.xlane.xlu0 %548 }
 0x1ab   :  { %v1071_v51 = vadd.f32 %v1031_v3, %v543_v55  ;;  %v1253_v61 = vsel %vm1134_vm1, %v1252_v33, %v1248_v19 }
 0x1ad   :  { %v1243_v45 = vrot.slane %v1071_v51, %v2367_v10 }
 0x1ae   :  { %v1041_v41 = vpop.xlane.xlu1 %1040  ;;  %v555_v28 = vpop.xlane.xlu0 %554 }
 0x1af   :  { %v1076_v15 = vadd.f32 %v1041_v41, %v553_v57  ;;  %v1244_v63 = vsel %vm1148_vm3, %v1243_v45, %v1239_v40  ;;  %v1386_v57 = vld [vmem:[%s2435_s3] ss:$0 sm:$0xff] }
 0x1b0   :  { %v1292_v22 = vsel %vm1291_vm8, %v1244_v63, %v1290_v6 }
 0x1b1   :  { %v1267_v4 = vrot.slane %v1076_v15, %v2345_v43 }
 0x1b2   :  { %v1037_v49 = vpop.xlane.xlu0 %1036  ;;  %v551_v26 = vpop.xlane.xlu1 %550 }
 0x1b3   :  { %v1074_v42 = vadd.f32 %v1037_v49, %v549_v12 }
 0x1b5   :  { %v1257_v31 = vrot.slane %v1074_v42, %v2356_v16 }
 0x1b6   :  { %v1043_v23 = vpop.xlane.xlu0 %1042  ;;  %v1039_v50 = vpop.xlane.xlu1 %1038 }
 0x1b7   :  { %v1075_v38 = vadd.f32 %v1039_v50, %v551_v26  ;;  %v1077_v25 = vadd.f32 %v1043_v23, %v555_v28  ;;  %v1258_v39 = vsel %vm1141_vm2, %v1257_v31, %v1253_v61 }
 0x1b9   :  { %v1262_v29 = vrot.slane %v1075_v38, %v2367_v10  ;;  %v1271_v52 = vrot.slane %v1077_v25, %v2348_v34 }
 0x1ba   :  { %v557_v32 = vpop.xlane.xlu0 %556  ;;  %v559_v60 = vpop.xlane.xlu1 %558 }
 0x1bb   :  { %v1263_v34 = vsel %vm1148_vm3, %v1262_v29, %v1258_v39  ;;  %v1272_v62 = vsel %vm1134_vm1, %v1271_v52, %v1267_v4 }
 0x1bc   :  { %v1294_v55 = vsel %vm1293_vm9, %v1263_v34, %v1292_v22 }
 0x1be   :  { %v1045_v24 = vpop.xlane.xlu0 %1044 }
 0x1bf   :  { %v1078_v8 = vadd.f32 %v1045_v24, %v557_v32 }
 0x1c1   :  { %v1276_v7 = vrot.slane %v1078_v8, %v2356_v16 }
 0x1c2   :  { %v1047_v14 = vpop.xlane.xlu0 %1046 }
 0x1c3   :  { %v1079_v0 = vadd.f32 %v1047_v14, %v559_v60  ;;  %v1277_v16 = vsel %vm1141_vm2, %v1276_v7, %v1272_v62 }
 0x1c5   :  { %v1281_v56 = vrot.slane %v1079_v0, %v2367_v10 }
 0x1c7   :  { %v1282_v43 = vsel %vm1148_vm3, %v1281_v56, %v1277_v16 }
 0x1c8   :  { %v1296_v2 = vsel %vm1295_vm10, %v1282_v43, %v1294_v55 }
 0x1c9   :  { %1402 = vmatmul.mubr.msk.f32.vlgmr.msra.gmra.mrb[0].mxu0 %vm1297_vm11, %v1296_v2 }
 0x29c   :  { %v1366_v9 = vpop.f32.mrb[0].mxu0 }
 0x29d   :  { %v1367_v35 = vadd.f32 %v1386_v57, %v1366_v9  ;;  %v1403_v10 = vpop.f32.mrb[1].mxu0 }
 0x29f   :  { %1370 = vst [vmem:[#allocation5] sm:$0xff] %v1367_v35 }
 0x2a0   :  { %1460 = shalt.err (!%p1457_p12)
}
 0x2a1   :  { %s1461_s23 = scalar_lea.hbm %s2436_s4, 128 }
 0x2a2   :  { %p1462_p13 = scmp.ne.s32.totalorder %s2436_s4, %s1461_s23  ;;  %p1465_p0 = scmp.lt.u32.totalorder %s1461_s23, %s2436_s4 }
 0x2a4   :  { %p1467_p1 = pnand %p1465_p0, %p1462_p13 }
 0x2a6   :  { %1470 = shalt.err (!%p1467_p1)
}
 0x2a7   :  { %1380 = dma.vmem_to_hbm [thread:$0]  %s1378_s19, 128, %s2436_s4, [#allocation4]  }
 0x2a8   :  { %1473 = dma.done.wait [#allocation4], 128  }
 0x2a9   :  { %1474 = vsyncadd [#allocation4], 4294967168 }
 0x2aa   :  { %1384 = vsyncpa [#allocation3], 1 }
 0x2ab   :  { %1385 = vsyncpa [#allocation4], 1 }

</bundles_post_ra>
